<compile_context>
chip_gen: v7x
topology: tpu7x:2x2x1
jax: 0.10.0
libtpu: 0.0.40
codegen_flags: <defaults>
</compile_context>

<pallas_src>
import functools
import math

import jax
import jax.numpy as jnp
from jax.experimental import pallas as pl
from jax.experimental.pallas import tpu as pltpu


def _cape2d_kernel(patches_ref, coefx_ref, phasey_ref, out_ref, *,
                   content_scale, block_rows, inv_x_denom):
    # patches_ref / out_ref : (TX, TL) lane-dense tiles
    # coefx_ref / phasey_ref: (1, TL)  tables (grid-invariant along the x axis)
    i = pl.program_id(0)

    # Global x index of each row in this block -> torch.linspace(-1, 1, X)[x].
    row = jax.lax.broadcasted_iota(jnp.int32, (block_rows, 1), 0).astype(jnp.float32)
    x0 = (i * block_rows).astype(jnp.float32)
    x_pos = -1.0 + (x0 + row) * jnp.float32(inv_x_denom)            # (TX, 1)

    # phase = pi*(w_x*x + w_y*y), with a -pi/2 shift pre-folded into the "sin"
    # channel half so pos_emb == cos(phase) everywhere: no concat along a
    # sub-128 lane axis, no where-select, one EUP op per element.
    phase = coefx_ref[...] * x_pos + phasey_ref[...]                 # (TX, TL) VPU FMAs
    pos_emb = jnp.cos(phase)

    x = patches_ref[...].astype(jnp.float32)
    out_ref[...] = (x * jnp.float32(content_scale) + pos_emb).astype(out_ref.dtype)


def _round_up(n, m):
    return ((n + m - 1) // m) * m


def _vmem_budgets():
    """(vmem_limit_bytes, tile_budget_bytes), generation-aware."""
    try:
        cap = int(pltpu.get_tpu_info().vmem_capacity_bytes)
    except Exception:
        cap = 64 << 20                       # conservative fallback (v7x per-TC VMEM)
    cap = min(max(cap, 32 << 20), 128 << 20)
    vmem_limit = (cap * 3) // 4              # ~96 MiB on v5e/v6e, ~48 MiB on v7x
    tile_budget = vmem_limit - (8 << 20)     # headroom for Mosaic internal scratch
    return vmem_limit, tile_budget


def _num_tensorcores():
    """2 on v7x (dual-TensorCore chips), else 1 (v5e/v6e)."""
    try:
        kind = jax.devices()[0].device_kind.lower()
    except Exception:
        return 1
    return 2 if ("v7" in kind or "7x" in kind) else 1


def _pick_tiles(X, L, io_bytes, tile_budget, num_tc):
    """Pick the (tx, tl) block shape for the lane-dense (X, L) layout.

    tx is a multiple of 8 (or == X) and tl a multiple of 128 (or == L), so the
    (8, 128) BlockSpec rule holds even with ragged cdiv grids.  Per-element
    footprint model: double-buffered input + output blocks plus ~4 f32
    elementwise temporaries inside the kernel body.
    """
    per_elem = 4 * io_bytes + 16

    # Lane (last) axis: keep the whole row (one long unmasked vst stream) when an
    # 8-row slab fits; otherwise block it on large multiples of 128 (matters on
    # v7x where VMEM is 64 MiB and L = Y*B*C can be huge).
    if 8 * _round_up(L, 128) * per_elem <= tile_budget:
        tl = L
    else:
        tl = max(128, ((tile_budget // (8 * per_elem)) // 128) * 128)
        tl = min(tl, L)
    tl_pad = _round_up(tl, 128)

    # Row (sublane) axis: grow to the budget net of the double-buffered (1, tl)
    # f32 tables.  Single-TC chips (v5e/v6e) take the whole budget even if that
    # means a grid of length 1; v7x keeps balanced row blocks per TensorCore.
    row_budget = max(tile_budget - 16 * tl_pad, 8 * tl_pad * per_elem)
    max_tx = max(8, ((row_budget // (tl_pad * per_elem)) // 8) * 8)
    if num_tc > 1 and X > 8:
        per_core = max(8, _round_up(pl.cdiv(X, 2 * num_tc), 8))
        max_tx = min(max_tx, per_core)
    tx = min(_round_up(X, 8), max_tx)
    if tx >= X:
        tx = X                               # full-extent block (any X is legal)
    return tx, tl


def cape2d_forward(patches, w_x, w_y, content_scale):
    """CAPE2d eval-mode forward.  patches: (X, Y, B, C) f32/bf16; w_x/w_y: (C//2,)."""
    X, Y, B, C = patches.shape
    half = C // 2
    L = Y * B * C

    # ---- host-side precompute of grid-invariant, lane-dense tables ----------
    ch = jnp.arange(C)
    k = ch % half                                       # channel -> frequency index
    sin_shift = (ch >= half).astype(jnp.float32) * (math.pi / 2.0)
    y_pos = jnp.linspace(-1.0, 1.0, Y)                  # Y == 1 -> [-1.] (torch-compatible)
    coef_x = (math.pi * w_x.astype(jnp.float32))[k]                              # (C,)
    phase_y = (math.pi * w_y.astype(jnp.float32))[k][None, :] * y_pos[:, None]   # (Y, C)
    phase_y = phase_y - sin_shift[None, :]              # fold sin -> cos(phase - pi/2)
    coef_flat = jnp.broadcast_to(coef_x[None, None, :], (Y, B, C)) \
        .reshape(1, L).astype(jnp.float32)
    phase_flat = jnp.broadcast_to(phase_y[:, None, :], (Y, B, C)) \
        .reshape(1, L).astype(jnp.float32)

    patches_flat = patches.reshape(X, L)                # free row-major view

    vmem_limit, tile_budget = _vmem_budgets()
    tx, tl = _pick_tiles(X, L, patches_flat.dtype.itemsize, tile_budget,
                         _num_tensorcores())
    grid = (pl.cdiv(X, tx), pl.cdiv(L, tl))             # ragged last blocks are masked

    kernel = functools.partial(
        _cape2d_kernel,
        content_scale=float(content_scale),
        block_rows=tx,
        inv_x_denom=2.0 / float(max(X - 1, 1)),         # X == 1 guard -> x_pos = -1
    )

    out_flat = pl.pallas_call(
        kernel,
        out_shape=jax.ShapeDtypeStruct((X, L), patches.dtype),
        grid_spec=pltpu.PrefetchScalarGridSpec(
            num_scalar_prefetch=0,
            grid=grid,
            in_specs=[
                pl.BlockSpec((tx, tl), lambda i, j: (i, j)),
                pl.BlockSpec((1, tl), lambda i, j: (0, j)),   # grid-invariant along x
                pl.BlockSpec((1, tl), lambda i, j: (0, j)),   # grid-invariant along x
            ],
            out_specs=pl.BlockSpec((tx, tl), lambda i, j: (i, j)),
        ),
        # In-place elementwise update: under jit with a donatable operand this
        # avoids a second (X, L) HBM allocation / copy around the custom call.
        input_output_aliases={0: 0},
        compiler_params=pltpu.CompilerParams(
            dimension_semantics=("parallel", "parallel"),
            vmem_limit_bytes=int(vmem_limit)),
    )(patches_flat, coef_flat, phase_flat)

    return out_flat.reshape(X, Y, B, C)


def cape2d_reference(patches, w_x, w_y, content_scale):
    """Pure-JAX reference mirroring CAPE2d.forward (eval mode, batch_first=False)."""
    X, Y, B, C = patches.shape
    x = jnp.linspace(-1.0, 1.0, X)[None, :, None] * jnp.ones((B, X, Y))
    y = jnp.linspace(-1.0, 1.0, Y)[None, None, :] * jnp.ones((B, X, Y))
    phase = jnp.pi * (w_x[None, None, None, :] * x[:, :, :, None]
                      + w_y[None, None, None, :] * y[:, :, :, None])
    pos_emb = jnp.concatenate([jnp.cos(phase), jnp.sin(phase)], axis=-1)  # (B,X,Y,C)
    pos_emb = jnp.transpose(pos_emb, (1, 2, 0, 3))                        # (X,Y,B,C)
    return patches.astype(jnp.float32) * content_scale + pos_emb


if __name__ == "__main__":
    # Module hyper-parameters (deterministic "init", no checkpoint load).
    d_model = 32
    half = d_model // 2
    rho = 10.0 ** jnp.linspace(0.0, 1.0, half)
    w_x = (rho * jnp.cos(jnp.arange(half, dtype=jnp.float32))).astype(jnp.float32)
    w_y = (rho * jnp.sin(jnp.arange(half, dtype=jnp.float32))).astype(jnp.float32)
    content_scale = math.sqrt(d_model)

    # Example input: (patches_x, patches_y, batch, d_model) = (16, 16, 2, 32)
    key = jax.random.PRNGKey(0)
    patches = jax.random.normal(key, (16, 16, 2, d_model), dtype=jnp.float32)

    # ---- float32 path -------------------------------------------------------
    ref = cape2d_reference(patches, w_x, w_y, content_scale)
    out = jax.block_until_ready(cape2d_forward(patches, w_x, w_y, content_scale))
    assert out.shape == patches.shape and out.dtype == patches.dtype
    assert jnp.allclose(out, ref, atol=1e-3, rtol=1e-3), "f32 mismatch vs reference"

    # ---- bfloat16 I/O path (recommended default: ~2x HBM-bandwidth win) -----
    patches_bf16 = patches.astype(jnp.bfloat16)
    ref_bf16 = cape2d_reference(patches_bf16.astype(jnp.float32), w_x, w_y, content_scale)
    out_bf16 = jax.block_until_ready(
        cape2d_forward(patches_bf16, w_x, w_y, content_scale))
    assert out_bf16.dtype == jnp.bfloat16
    assert jnp.allclose(out_bf16.astype(jnp.float32), ref_bf16, atol=0.15, rtol=0.05), \
        "bf16 mismatch vs reference"

    print("KERNEL_OK")
</pallas_src>

<mosaic_0001>
module attributes {stable_mosaic.version = 11 : i64} {
  func.func @_cape2d_kernel(%arg0: i32, %arg1: i32, %arg2: memref<16x1024xf32, #tpu.memory_space<vmem>>, %arg3: memref<1x1024xf32, #tpu.memory_space<vmem>>, %arg4: memref<1x1024xf32, #tpu.memory_space<vmem>>, %arg5: memref<16x1024xf32, #tpu.memory_space<vmem>>) attributes {dimension_semantics = [#tpu.dimension_semantics<parallel>, #tpu.dimension_semantics<parallel>], iteration_bounds = array<i64: 1, 1>, scalar_prefetch = 0 : i64, scratch_operands = 0 : i64, tpu.core_type = #tpu.core_type<tc>, window_params = [{transform_indices = @transform_0, window_bounds = array<i64: 16, 1024>}, {transform_indices = @transform_1, window_bounds = array<i64: 1, 1024>}, {transform_indices = @transform_2, window_bounds = array<i64: 1, 1024>}, {transform_indices = @transform_3, window_bounds = array<i64: 16, 1024>}]} {
    %0 = tpu.iota {dimensions = array<i32: 0>} : vector<16x1xi32>
    %1 = arith.sitofp %0 : vector<16x1xi32> to vector<16x1xf32>
    %c16_i32 = arith.constant 16 : i32
    %2 = arith.muli %arg0, %c16_i32 : i32
    %3 = arith.sitofp %2 : i32 to f32
    %4 = vector.broadcast %3 : f32 to vector<16x1xf32>
    %5 = arith.addf %4, %1 : vector<16x1xf32>
    %cst = arith.constant 0.13333334 : f32
    %6 = vector.broadcast %cst : f32 to vector<16x1xf32>
    %7 = arith.mulf %5, %6 : vector<16x1xf32>
    %cst_0 = arith.constant -1.000000e+00 : f32
    %8 = vector.broadcast %cst_0 : f32 to vector<16x1xf32>
    %9 = arith.addf %8, %7 : vector<16x1xf32>
    %c0 = arith.constant 0 : index
    %c0_1 = arith.constant 0 : index
    %10 = vector.load %arg3[%c0, %c0_1] : memref<1x1024xf32, #tpu.memory_space<vmem>>, vector<1x1024xf32>
    %11 = vector.broadcast %10 : vector<1x1024xf32> to vector<16x1024xf32>
    %12 = vector.broadcast %9 : vector<16x1xf32> to vector<16x1024xf32>
    %13 = arith.mulf %11, %12 : vector<16x1024xf32>
    %c0_2 = arith.constant 0 : index
    %c0_3 = arith.constant 0 : index
    %14 = vector.load %arg4[%c0_2, %c0_3] : memref<1x1024xf32, #tpu.memory_space<vmem>>, vector<1x1024xf32>
    %15 = vector.broadcast %14 : vector<1x1024xf32> to vector<16x1024xf32>
    %16 = arith.addf %13, %15 : vector<16x1024xf32>
    %17 = math.cos %16 : vector<16x1024xf32>
    %c0_4 = arith.constant 0 : index
    %c0_5 = arith.constant 0 : index
    %18 = vector.load %arg2[%c0_4, %c0_5] : memref<16x1024xf32, #tpu.memory_space<vmem>>, vector<16x1024xf32>
    %cst_6 = arith.constant 5.65685415 : f32
    %19 = vector.broadcast %cst_6 : f32 to vector<16x1024xf32>
    %20 = arith.mulf %18, %19 : vector<16x1024xf32>
    %21 = arith.addf %20, %17 : vector<16x1024xf32>
    %c0_7 = arith.constant 0 : index
    %c0_8 = arith.constant 0 : index
    %22 = vector.load %arg5[%c0_7, %c0_8] : memref<16x1024xf32, #tpu.memory_space<vmem>>, vector<16x1024xf32>
    tpu.vector_store %arg5[%c0_7, %c0_8], %21 {strides = array<i32>} : memref<16x1024xf32, #tpu.memory_space<vmem>>, vector<16x1024xf32>,
    return
  }
  func.func @transform_0(%arg0: i32, %arg1: i32) -> (i32, i32) {
    %c0_i32 = arith.constant 0 : i32
    return %arg0, %arg1 : i32, i32
  }
  func.func @transform_1(%arg0: i32, %arg1: i32) -> (i32, i32) {
    %c0_i32 = arith.constant 0 : i32
    %c0_i32_0 = arith.constant 0 : i32
    return %c0_i32, %arg1 : i32, i32
  }
  func.func @transform_2(%arg0: i32, %arg1: i32) -> (i32, i32) {
    %c0_i32 = arith.constant 0 : i32
    %c0_i32_0 = arith.constant 0 : i32
    return %c0_i32, %arg1 : i32, i32
  }
  func.func @transform_3(%arg0: i32, %arg1: i32) -> (i32, i32) {
    %c0_i32 = arith.constant 0 : i32
    return %arg0, %arg1 : i32, i32
  }
}

</mosaic_0001>

<bundles_post_ra>
// kernel: tpu_custom_call.1
= control target key start
LH: loop header
LB: loop body
LE: loop exit
PB: predicated region body
PF: predicated region fallthrough
CT: control target
= control target key end

     0   :  { %8 = vsyncpa [#allocation3], 0  ;;  %s3937_s0 = inlined_call_operand.hbm [shape: f32[16,1024], index: 0, kind: input, shape index: {}, may-alias: {0,3}]   ;;  %s3938_s1 = inlined_call_operand.vmem [shape: f32[1,1024], index: 1, kind: input, shape index: {}]   ;;  %s3939_s2 = inlined_call_operand.vmem [shape: f32[1,1024], index: 2, kind: input, shape index: {}]   ;;  %s3940_s3 = inlined_call_operand.hbm [shape: f32[16,1024], index: 3, kind: output, shape index: {}, may-alias: {0,3}]  }
   0x1   :  { %9 = vsyncpa [#allocation4], 0  ;;  %s2138_s12 = smov [#allocation2]   ;;  %s2090_s16 = scalar_lea.hbm %s3937_s0, 2048 }
   0x2   :  { %s15_s13 = sshll.u32 %s2138_s12, 4  ;;  %p2091_p0 = scmp.ne.s32.totalorder %s3937_s0, %s2090_s16  ;;  %s16_s13 = int_to_ptr.vmem [resolvable:$true] %s15_s13 }
   0x3   :  { %p2094_p1 = scmp.lt.u32.totalorder %s2090_s16, %s3937_s0 }
   0x5   :  { %p2096_p2 = pnand %p2094_p1, %p2091_p0 }
   0x7   :  { %2099 = shalt.err (!%p2096_p2)
}
   0x8   :  { %s2100_s21 = scalar_lea.vmem %s16_s13, 2048  ;;  %p2105_p4 = scmp.lt.s32.totalorder %s16_s13, %s16_s13 }
   0x9   :  { %p2101_p3 = scmp.ne.s32.totalorder %s16_s13, %s2100_s21  ;;  %p2106_p5 = scmp.lt.s32.totalorder %s2100_s21, %s2100_s21 }
   0xb   :  { %p2107_p6 = por %p2106_p5, %p2105_p4 }
   0xd   :  { %p2108_p7 = pnand %p2107_p6, %p2101_p3 }
   0xf   :  { %2111 = shalt.err (!%p2108_p7)
}
  0x10   :  { %s2139_s22 = smov 1024   ;;  %s2140_s23 = smov 64  }
  0x11   :  { %21 = dma.hbm_to_vmem [thread:$0]  %s3937_s0, 2048, %s16_s13, [#allocation3], %s2139_s22, %s2139_s22, %s2140_s23  }
  0x12   :  { %2134 = dma.done.wait [#allocation3], 2048  }
  0x13   :  { %2135 = vsyncadd [#allocation3], 4294965248  ;;  %v29_v0 = vlaneseq  ;;  %v2191_v6 = vld [vmem:[%s3938_s1] sm:$0xff]  ;;  %v3953_v52 = vmov 683565275   ;;  %s2147_s1 = smov [#allocation5]  }
  0x14   :  { %v2205_v11 = vld [vmem:[%s3939_s2] sm:$0xff]  ;;  %v3947_v54 = vmov 2475754826   ;;  %v3945_v56 = vmov 2131351028   ;;  %s1876_s2 = sshll.u32 %s2147_s1, 4  ;;  %s1877_s2 = int_to_ptr.vmem [resolvable:$true] %s1876_s2 }
  0x15   :  { %v2183_v1 = vshrl.u32 %v29_v0, 7  ;;  %v3949_v58 = vmov 2102212464   ;;  %v3960_v60 = vmov 920167782   ;;  %s2112_s29 = scalar_lea.vmem %s1877_s2, 2048  ;;  %p2117_p9 = scmp.lt.s32.totalorder %s1877_s2, %s1877_s2 }
  0x16   :  { %p2113_p8 = scmp.ne.s32.totalorder %s1877_s2, %s2112_s29  ;;  %p2118_p10 = scmp.lt.s32.totalorder %s2112_s29, %s2112_s29 }
  0x17   :  { %v32_v2 = vcvt.s32.f32 %v2183_v1  ;;  %v47_v3 = vsub.s32 0, %v2183_v1  ;;  %v51_v5 = vsub.s32 1, %v2183_v1  ;;  %v55_v9 = vsub.s32 2, %v2183_v1 }
  0x18   :  { %v59_v25 = vsub.s32 3, %v2183_v1  ;;  %p2119_p11 = por %p2118_p10, %p2117_p9 }
  0x19   :  { %v39_v4 = vmul.f32 0.13333334, %v32_v2  ;;  %v2196_v8 = vrot.slane %v2191_v6, %v47_v3  ;;  %v2200_v10 = vrot.slane %v2191_v6, %v51_v5  ;;  %v2208_v12 = vrot.slane %v2191_v6, %v55_v9 }
  0x1a   :  { %v2215_v15 = vrot.slane %v2205_v11, %v47_v3  ;;  %v2218_v16 = vrot.slane %v2205_v11, %v51_v5  ;;  %v2223_v18 = vrot.slane %v2205_v11, %v55_v9  ;;  %v2245_v33 = vrot.slane %v2191_v6, %v59_v25  ;;  %p2120_p12 = pnand %p2119_p11, %p2113_p8 }
  0x1b   :  { %v2193_v7 = vadd.f32 -1.0, %v39_v4  ;;  %v2252_v43 = vrot.slane %v2205_v11, %v59_v25  ;;  %v3958_v5 = vmov 1326507024  }
  0x1d   :  { %v85_v13 = vmul.f32 %v2196_v8, %v2193_v7  ;;  %v86_v14 = vmul.f32 %v2200_v10, %v2193_v7  ;;  %v87_v17 = vmul.f32 %v2208_v12, %v2193_v7  ;;  %v2249_v41 = vmul.f32 %v2245_v33, %v2193_v7 }
  0x1f   :  { %v2226_v19 = vadd.f32 %v2215_v15, %v85_v13  ;;  %v2229_v20 = vadd.f32 %v2218_v16, %v86_v14  ;;  %v2233_v22 = vadd.f32 %v2223_v18, %v87_v17 }
  0x21   :  { %v3944_v21 = vand.u32 2147483647, %v2226_v19  ;;  %v162_v23 = vand.u32 2139095040, %v2226_v19  ;;  %v3943_v24 = vand.u32 2147483647, %v2229_v20  ;;  %v265_v26 = vand.u32 2139095040, %v2229_v20 }
  0x22   :  { %v368_v32 = vand.u32 2139095040, %v2233_v22 }
  0x23   :  { %v163_v27 = vshrl.u32 %v162_v23, 23  ;;  %v166_v28 = vand.u32 8388607, %v3944_v21  ;;  %v266_v29 = vshrl.u32 %v265_v26, 23  ;;  %v269_v30 = vand.u32 8388607, %v3943_v24 }
  0x24   :  { %v369_v36 = vshrl.u32 %v368_v32, 23 }
  0x25   :  { %v1888_v31 = vadd.s32 4294967169, %v163_v27  ;;  %v1892_v34 = vadd.s32 4294967169, %v266_v29  ;;  %v167_v37 = vor.u32 8388608, %v166_v28  ;;  %v270_v38 = vor.u32 8388608, %v269_v30 }
  0x26   :  { %v1896_v40 = vadd.s32 4294967169, %v369_v36 }
  0x27   :  { %v169_v35 = vadd.s32 1, %v1888_v31  ;;  %v272_v39 = vadd.s32 1, %v1892_v34  ;;  %v2254_v47 = vshll.u32 %v167_v37, 8  ;;  %v2256_v49 = vshll.u32 %v270_v38, 8 }
  0x28   :  { %v2258_v50 = vadd.s32 1, %v1896_v40 }
  0x29   :  { %vm170_vm0 = vcmp.gt.s32.totalorder %v169_v35, 0  ;;  %vm273_vm1 = vcmp.gt.s32.totalorder %v272_v39, 0 }
  0x2a   :  { %v171_v42 = vsel %vm170_vm0, %v169_v35, 0  ;;  %v274_v46 = vsel %vm273_vm1, %v272_v39, 0  ;;  %vm376_vm11 = vcmp.gt.s32.totalorder %v2258_v50, 0 }
  0x2b   :  { %v172_v44 = vshrl.u32 %v171_v42, 5  ;;  %v173_v45 = vand.u32 31, %v171_v42  ;;  %v276_v48 = vand.u32 31, %v274_v46  ;;  %v2265_v62 = vshrl.u32 %v274_v46, 5 }
  0x2d   :  { %v174_v51 = vsub.s32 32, %v173_v45  ;;  %v176_v53 = vshll.u32 %v3953_v52, %v173_v45  ;;  %v179_v55 = vshll.u32 %v3947_v54, %v173_v45  ;;  %v182_v57 = vshll.u32 %v3945_v56, %v173_v45 }
  0x2e   :  { %v185_v59 = vshll.u32 %v3949_v58, %v173_v45  ;;  %v188_v61 = vshll.u32 %v3960_v60, %v173_v45  ;;  %vm191_vm2 = vcmp.lt.s32.totalorder %v172_v44, 1  ;;  %vm192_vm3 = vcmp.lt.s32.totalorder %v172_v44, 2 }
  0x2f   :  { %v175_v63 = vshrl.u32 %v3953_v52, %v174_v51  ;;  %v177_v0 = vshrl.u32 %v3947_v54, %v174_v51  ;;  %v180_v2 = vshrl.u32 %v3945_v56, %v174_v51  ;;  %v183_v3 = vshrl.u32 %v3949_v58, %v174_v51 }
  0x30   :  { %v186_v4 = vshrl.u32 %v3960_v60, %v174_v51  ;;  %v189_v9 = vshrl.u32 %v3958_v5, %v174_v51  ;;  %vm194_vm4 = vcmp.lt.s32.totalorder %v172_v44, 4  ;;  %v277_v23 = vsub.s32 32, %v276_v48 }
  0x31   :  { %v178_v13 = vor.u32 %v177_v0, %v176_v53  ;;  %v181_v14 = vor.u32 %v180_v2, %v179_v55  ;;  %v184_v17 = vor.u32 %v183_v3, %v182_v57  ;;  %vm193_vm5 = vcmp.lt.s32.totalorder %v172_v44, 3 }
  0x32   :  { %v187_v25 = vor.u32 %v186_v4, %v185_v59  ;;  %v190_v26 = vor.u32 %v189_v9, %v188_v61  ;;  %v279_v27 = vshll.u32 %v3953_v52, %v276_v48  ;;  %v282_v36 = vshll.u32 %v3947_v54, %v276_v48 }
  0x33   :  { %v195_v28 = vsel %vm191_vm2, %v175_v63, %v178_v13  ;;  %v196_v29 = vsel %vm194_vm4, %v184_v17, 2102212464  ;;  %v199_v30 = vsel %vm191_vm2, %v178_v13, %v181_v14  ;;  %v203_v31 = vsel %vm191_vm2, %v181_v14, %v184_v17 }
  0x34   :  { %v197_v32 = vsel %vm193_vm5, %v181_v14, %v196_v29  ;;  %v200_v34 = vsel %vm194_vm4, %v187_v25, 920167782  ;;  %v204_v35 = vsel %vm194_vm4, %v190_v26, 1326507024  ;;  %v278_v39 = vshrl.u32 %v3953_v52, %v277_v23 }
  0x35   :  { %v201_v37 = vsel %vm193_vm5, %v184_v17, %v200_v34  ;;  %v205_v38 = vsel %vm193_vm5, %v187_v25, %v204_v35  ;;  %v280_v40 = vshrl.u32 %v3947_v54, %v277_v23  ;;  %v198_v42 = vsel %vm192_vm3, %v195_v28, %v197_v32 }
  0x36   :  { %v202_v45 = vsel %vm192_vm3, %v199_v30, %v201_v37  ;;  %v206_v46 = vsel %vm192_vm3, %v203_v31, %v205_v38  ;;  %v283_v51 = vshrl.u32 %v3945_v56, %v277_v23  ;;  %v285_v0 = vshll.u32 %v3945_v56, %v276_v48 }
  0x37   :  { %v2285_v53 = vmul.u32.u64.low %v2254_v47, %v206_v46  ;;  %v2286_v55 = vmul.u32.u64.high %v2254_v47, %v206_v46, %v2285_v53  ;;  %v2289_v57 = vmul.u32.u64.low %v2254_v47, %v202_v45  ;;  %v2290_v59 = vmul.u32.u64.high %v2254_v47, %v202_v45, %v2289_v57 }
  0x38   :  { %v281_v61 = vor.u32 %v280_v40, %v279_v27  ;;  %v284_v63 = vor.u32 %v283_v51, %v282_v36  ;;  %v286_v2 = vshrl.u32 %v3949_v58, %v277_v23  ;;  %v288_v44 = vshll.u32 %v3949_v58, %v276_v48 }
  0x39   :  { %v289_v3 = vshrl.u32 %v3960_v60, %v277_v23  ;;  %v291_v4 = vshll.u32 %v3960_v60, %v276_v48  ;;  %v292_v9 = vshrl.u32 %v3958_v5, %v277_v23  ;;  %v214_v13 = vmul.u32 %v2254_v47, %v198_v42 }
  0x3a   :  { %v287_v14 = vor.u32 %v286_v2, %v285_v0  ;;  %vm294_vm6 = vcmp.lt.s32.totalorder %v2265_v62, 1  ;;  %vm295_vm7 = vcmp.lt.s32.totalorder %v2265_v62, 2  ;;  %vm216_vm8 = vc.u32 %v2286_v55, %v2289_v57 }
  0x3b   :  { %v217_v17 = vadd.s32 1, %v2290_v59  ;;  %v290_v25 = vor.u32 %v289_v3, %v288_v44  ;;  %vm296_vm9 = vcmp.lt.s32.totalorder %v2265_v62, 3  ;;  %v293_v26 = vor.u32 %v292_v9, %v291_v4 }
  0x3c   :  { %vm297_vm10 = vcmp.lt.s32.totalorder %v2265_v62, 4  ;;  %v298_v48 = vsel %vm294_vm6, %v278_v39, %v281_v61  ;;  %v302_v23 = vsel %vm294_vm6, %v281_v61, %v284_v63  ;;  %v306_v29 = vsel %vm294_vm6, %v284_v63, %v287_v14 }
  0x3d   :  { %v218_v47 = vsel %vm216_vm8, %v217_v17, %v2290_v59  ;;  %v299_v27 = vsel %vm297_vm10, %v287_v14, 2102212464  ;;  %v303_v28 = vsel %vm297_vm10, %v290_v25, 920167782  ;;  %v307_v34 = vsel %vm297_vm10, %v293_v26, 1326507024 }
  0x3e   :  { %v219_v30 = vadd.s32 %v218_v47, %v214_v13  ;;  %v300_v31 = vsel %vm296_vm9, %v284_v63, %v299_v27  ;;  %v304_v32 = vsel %vm296_vm9, %v287_v14, %v303_v28  ;;  %v308_v37 = vsel %vm296_vm9, %v290_v25, %v307_v34 }
  0x3f   :  { %v301_v35 = vsel %vm295_vm7, %v298_v48, %v300_v31  ;;  %v305_v36 = vsel %vm295_vm7, %v302_v23, %v304_v32  ;;  %v309_v39 = vsel %vm295_vm7, %v306_v29, %v308_v37  ;;  %v377_v51 = vsel %vm376_vm11, %v2258_v50, 0 }
  0x40   :  { %v220_v38 = vadd.s32 536870912, %v219_v30  ;;  %v2316_v40 = vmul.u32.u64.low %v2256_v49, %v305_v36  ;;  %v2317_v42 = vmul.u32.u64.high %v2256_v49, %v305_v36, %v2316_v40  ;;  %v379_v53 = vand.u32 31, %v377_v51 }
  0x41   :  { %v2321_v45 = vmul.u32.u64.low %v2256_v49, %v309_v39  ;;  %v2322_v46 = vmul.u32.u64.high %v2256_v49, %v309_v39, %v2321_v45  ;;  %v2327_v59 = vadd.f32 %v2252_v43, %v2249_v41  ;;  %v317_v62 = vmul.u32 %v2256_v49, %v301_v35 }
  0x42   :  { %v2329_v61 = vshrl.u32 %v220_v38, 30  ;;  %v320_v63 = vadd.s32 1, %v2317_v42  ;;  %v3942_v0 = vand.u32 2147483647, %v2233_v22  ;;  %v380_v2 = vsub.s32 32, %v379_v53 }
  0x43   :  { %3971 = vst [vmem:[#allocation8_spill] sm:$0xff] %v2327_v59  ;;  %vm319_vm12 = vc.u32 %v2322_v46, %v2316_v40  ;;  %v471_v41 = vand.u32 2139095040, %v2327_v59  ;;  %v382_v49 = vshll.u32 %v3953_v52, %v379_v53  ;;  %v385_v14 = vshll.u32 %v3947_v54, %v379_v53 }
  0x44   :  { %v321_v44 = vsel %vm319_vm12, %v320_v63, %v2317_v42  ;;  %v222_v50 = vshll.u32 %v2329_v61, 30  ;;  %v372_v4 = vand.u32 8388607, %v3942_v0  ;;  %v383_v9 = vshrl.u32 %v3947_v54, %v380_v2 }
  0x45   :  { %v322_v3 = vadd.s32 %v321_v44, %v317_v62  ;;  %v386_v17 = vshrl.u32 %v3945_v56, %v380_v2  ;;  %v391_v25 = vshll.u32 %v3949_v58, %v379_v53  ;;  %v378_v26 = vshrl.u32 %v377_v51, 5 }
  0x46   :  { %v388_v48 = vshll.u32 %v3945_v56, %v379_v53  ;;  %v389_v23 = vshrl.u32 %v3949_v58, %v380_v2  ;;  %v2348_v47 = vsub.s32 %v219_v30, %v222_v50  ;;  %v392_v27 = vshrl.u32 %v3960_v60, %v380_v2 }
  0x47   :  { %v323_v13 = vadd.s32 536870912, %v322_v3  ;;  %v472_v28 = vshrl.u32 %v471_v41, 23  ;;  %v31_v29 = vadd.s32 8, %v2183_v1  ;;  %v373_v32 = vor.u32 8388608, %v372_v4 }
  0x48   :  { %v384_v34 = vor.u32 %v383_v9, %v382_v49  ;;  %v387_v35 = vor.u32 %v386_v17, %v385_v14  ;;  %v393_v36 = vor.u32 %v392_v27, %v391_v25  ;;  %v394_v37 = vshll.u32 %v3960_v60, %v379_v53 }
  0x49   :  { %v2352_v31 = vshrl.u32 %v323_v13, 30  ;;  %v395_v38 = vshrl.u32 %v3958_v5, %v380_v2  ;;  %v390_v39 = vor.u32 %v389_v23, %v388_v48  ;;  %vm397_vm13 = vcmp.lt.s32.totalorder %v378_v26, 1 }
  0x4a   :  { %vm400_vm14 = vcmp.lt.s32.totalorder %v378_v26, 4  ;;  %v225_v30 = vsub.s32 0, %v2348_v47  ;;  %v381_v42 = vshrl.u32 %v3953_v52, %v380_v2  ;;  %vm399_vm15 = vcmp.lt.s32.totalorder %v378_v26, 3 }
  0x4b   :  { %v1900_v45 = vadd.s32 4294967169, %v472_v28  ;;  %v33_v51 = vcvt.s32.f32 %v31_v29  ;;  %v325_v62 = vshll.u32 %v2352_v31, 30  ;;  %v406_v63 = vsel %vm400_vm14, %v393_v36, 920167782 }
  0x4c   :  { %v413_v44 = vshll.u32 %v373_v32, 8  ;;  %v396_v50 = vor.u32 %v395_v38, %v394_v37  ;;  %vm398_vm0 = vcmp.lt.s32.totalorder %v378_v26, 2  ;;  %v402_v53 = vsel %vm400_vm14, %v390_v39, 2102212464 }
  0x4d   :  { %v405_v41 = vsel %vm397_vm13, %v384_v34, %v387_v35  ;;  %v63_v4 = vsub.s32 4, %v2183_v1  ;;  %v407_v49 = vsel %vm399_vm15, %v390_v39, %v406_v63  ;;  %v3955_v2 = vsub.s32 5, %v2183_v1 }
  0x4e   :  { %v1889_v9 = vmin.u32 %v225_v30, %v2348_v47  ;;  %v401_v13 = vsel %vm397_vm13, %v381_v42, %v384_v34  ;;  %v478_v14 = vadd.s32 1, %v1900_v45  ;;  %v2367_v17 = vsub.s32 %v322_v3, %v325_v62 }
  0x4f   :  { %v403_v25 = vsel %vm399_vm15, %v387_v35, %v402_v53  ;;  %v408_v48 = vsel %vm398_vm0, %v405_v41, %v407_v49  ;;  %v409_v23 = vsel %vm397_vm13, %v387_v35, %v390_v39  ;;  %v40_v27 = vmul.f32 0.13333334, %v33_v51 }
  0x50   :  { %v410_v28 = vsel %vm400_vm14, %v396_v50, 1326507024  ;;  %v2373_v29 = vmul.u32.u64.low %v413_v44, %v408_v48  ;;  %v2374_v32 = vmul.u32.u64.high %v413_v44, %v408_v48, %v2373_v29  ;;  %v3952_v37 = vsub.s32 6, %v2183_v1 }
  0x51   :  { %v3951_v34 = vsub.s32 7, %v2183_v1  ;;  %v411_v3 = vsel %vm399_vm15, %v393_v36, %v410_v28  ;;  %v64_v38 = vrot.slane %v2191_v6, %v63_v4  ;;  %v404_v30 = vsel %vm398_vm0, %v401_v13, %v403_v25 }
  0x52   :  { %v412_v42 = vsel %vm398_vm0, %v409_v23, %v411_v3  ;;  %vm479_vm1 = vcmp.gt.s32.totalorder %v478_v14, 0  ;;  %v227_v35 = vclz %v1889_v9  ;;  %v328_v39 = vsub.s32 0, %v2367_v17 }
  0x53   :  { %v2384_v45 = vmul.u32.u64.low %v413_v44, %v412_v42  ;;  %v2385_v51 = vmul.u32.u64.high %v413_v44, %v412_v42, %v2384_v45  ;;  %v2387_v62 = vadd.f32 -1.0, %v40_v27  ;;  %v68_v63 = vrot.slane %v2191_v6, %v3955_v2 }
  0x54   :  { %v423_v36 = vadd.s32 1, %v2374_v32  ;;  %v480_v50 = vsel %vm479_vm1, %v478_v14, 0  ;;  %v2396_v26 = vrot.slane %v2191_v6, %v3952_v37  ;;  %v2401_v53 = vrot.slane %v2191_v6, %v3951_v34 }
  0x55   :  { %v420_v41 = vmul.u32 %v413_v44, %v404_v30  ;;  %v482_v49 = vand.u32 31, %v480_v50  ;;  %v89_v9 = vmul.f32 %v64_v38, %v2193_v7  ;;  %v2405_v13 = vrot.slane %v2205_v11, %v63_v4 }
  0x56   :  { %v3941_v25 = vand.u32 2147483647, %v2327_v59  ;;  %v1890_v14 = vadd.s32 4294967294, %v227_v35  ;;  %v1893_v48 = vmin.u32 %v328_v39, %v2367_v17  ;;  %vm422_vm2 = vc.u32 %v2385_v51, %v2373_v29 }
  0x57   :  { %v2412_v23 = vmul.f32 %v68_v63, %v2193_v7  ;;  %v424_v6 = vsel %vm422_vm2, %v423_v36, %v2374_v32  ;;  %v483_v44 = vsub.s32 32, %v482_v49  ;;  %v2417_v27 = vmul.f32 %v2396_v26, %v2193_v7 }
  0x58   :  { %v2421_v4 = vmul.f32 %v2401_v53, %v2193_v7  ;;  %v2425_v28 = vmul.f32 %v2196_v8, %v2387_v62  ;;  %v425_v3 = vadd.s32 %v424_v6, %v420_v41  ;;  %v2429_v30 = vmul.f32 %v2200_v10, %v2387_v62 }
  0x59   :  { %v2433_v32 = vmul.f32 %v2208_v12, %v2387_v62  ;;  %v2436_v42 = vadd.f32 %v2405_v13, %v89_v9  ;;  %v475_v7 = vand.u32 8388607, %v3941_v25  ;;  %vm1891_vm3 = vcmp.lt.s32.totalorder %v1890_v14, 0 }
  0x5a   :  { %v330_v35 = vclz %v1893_v48  ;;  %v426_v39 = vadd.s32 536870912, %v425_v3  ;;  %v481_v8 = vshrl.u32 %v480_v50, 5  ;;  %v485_v45 = vshll.u32 %v3953_v52, %v482_v49 }
  0x5b   :  { %v486_v36 = vshrl.u32 %v3947_v54, %v483_v44  ;;  %v488_v10 = vshll.u32 %v3947_v54, %v482_v49  ;;  %v489_v41 = vshrl.u32 %v3945_v56, %v483_v44  ;;  %v491_v9 = vshll.u32 %v3945_v56, %v482_v49 }
  0x5c   :  { %v2444_v12 = vshrl.u32 %v426_v39, 30  ;;  %v492_v6 = vshrl.u32 %v3949_v58, %v483_v44  ;;  %v494_v25 = vshll.u32 %v3949_v58, %v482_v49  ;;  %v2451_v48 = vmul.f32 %v2245_v33, %v2387_v62 }
  0x5d   :  { %v2454_v50 = vmul.f32 %v64_v38, %v2387_v62  ;;  %v476_v0 = vor.u32 8388608, %v475_v7  ;;  %v495_v24 = vshrl.u32 %v3960_v60, %v483_v44  ;;  %v2458_v21 = vsel %vm1891_vm3, 0, %v1890_v14 }
  0x5e   :  { %3972 = vst [vmem:[#allocation9_spill] sm:$0xff] %v2444_v12  ;;  %v428_v39 = vshll.u32 %v2444_v12, 30  ;;  %v497_v56 = vshll.u32 %v3960_v60, %v482_v49  ;;  %v498_v54 = vshrl.u32 %v3958_v5, %v483_v44  ;;  %v1894_v58 = vadd.s32 4294967294, %v330_v35 }
  0x5f   :  { %v487_v34 = vor.u32 %v486_v36, %v485_v45  ;;  %v490_v37 = vor.u32 %v489_v41, %v488_v10  ;;  %v496_v33 = vor.u32 %v495_v24, %v494_v25  ;;  %v493_v38 = vor.u32 %v492_v6, %v491_v9 }
  0x60   :  { %v2463_v52 = vsub.s32 %v425_v3, %v428_v39  ;;  %vm500_vm4 = vcmp.lt.s32.totalorder %v481_v8, 1  ;;  %v574_v7 = vand.u32 2139095040, %v2436_v42  ;;  %v2467_v2 = vmul.f32 %v68_v63, %v2387_v62 }
  0x61   :  { %v3973_v14 = vsub.s32 5, %v2183_v1  ;;  %v3974_v49 = vmov 683565275   ;;  %vm503_vm5 = vcmp.lt.s32.totalorder %v481_v8, 4  ;;  %v499_v35 = vor.u32 %v498_v54, %v497_v56 }
  0x62   :  { %v484_v5 = vshrl.u32 %v3974_v49, %v483_v44  ;;  %vm502_vm6 = vcmp.lt.s32.totalorder %v481_v8, 3  ;;  %v505_v24 = vsel %vm503_vm5, %v493_v38, 2102212464  ;;  %v516_v25 = vshll.u32 %v476_v0, 8 }
  0x63   :  { %v2472_v59 = vrot.slane %v2205_v11, %v3973_v14  ;;  %v235_v3 = vsub.s32 4294967266, %v2458_v21  ;;  %vm501_vm7 = vcmp.lt.s32.totalorder %v481_v8, 2  ;;  %v508_v45 = vsel %vm500_vm4, %v487_v34, %v490_v37 }
  0x64   :  { %v509_v63 = vsel %vm503_vm5, %v496_v33, 920167782  ;;  %v3975_v36 = vsub.s32 6, %v2183_v1  ;;  %vm1895_vm8 = vcmp.lt.s32.totalorder %v1894_v58, 0  ;;  %v431_v44 = vsub.s32 0, %v2463_v52 }
  0x65   :  { %v575_v54 = vshrl.u32 %v574_v7, 23  ;;  %v504_v56 = vsel %vm500_vm4, %v484_v5, %v487_v34  ;;  %v506_v0 = vsel %vm502_vm6, %v490_v37, %v505_v24  ;;  %v510_v41 = vsel %vm502_vm6, %v493_v38, %v509_v63 }
  0x66   :  { %v2482_v10 = vrot.slane %v2205_v11, %v3975_v36  ;;  %v512_v9 = vsel %vm500_vm4, %v490_v37, %v493_v38  ;;  %v215_v6 = vadd.s32 %v2289_v57, %v2286_v55  ;;  %v231_v39 = vsub.s32 32, %v2458_v21 }
  0x67   :  { %v511_v14 = vsel %vm501_vm7, %v508_v45, %v510_v41  ;;  %v513_v36 = vsel %vm503_vm5, %v499_v35, 1326507024  ;;  %v236_v60 = vadd.s32 127, %v235_v3  ;;  %v333_v34 = vsel %vm1895_vm8, 0, %v1894_v58 }
  0x68   :  { %v514_v7 = vsel %vm502_vm6, %v496_v33, %v513_v36  ;;  %v2495_v12 = vmul.u32.u64.low %v516_v25, %v511_v14  ;;  %v2496_v5 = vmul.u32.u64.high %v516_v25, %v511_v14, %v2495_v12  ;;  %v1897_v24 = vmin.u32 %v431_v44, %v2463_v52 }
  0x69   :  { %v507_v37 = vsel %vm501_vm7, %v504_v56, %v506_v0  ;;  %v515_v55 = vsel %vm501_vm7, %v512_v9, %v514_v7  ;;  %v3976_v57 = vsub.s32 7, %v2183_v1  ;;  %v1904_v33 = vadd.s32 4294967169, %v575_v54 }
  0x6a   :  { %v2507_v35 = vmul.u32.u64.low %v516_v25, %v515_v55  ;;  %v2508_v3 = vmul.u32.u64.high %v516_v25, %v515_v55, %v2507_v35  ;;  %v2512_v45 = vmul.f32 %v2396_v26, %v2387_v62  ;;  %v2516_v58 = vmul.f32 %v2401_v53, %v2387_v62 }
  0x6b   :  { %v2505_v38 = vrot.slane %v2205_v11, %v3976_v57  ;;  %v232_v8 = vshll.u32 %v2348_v47, %v2458_v21  ;;  %v233_v63 = vshrl.u32 %v215_v6, %v231_v39  ;;  %v338_v1 = vsub.s32 4294967266, %v333_v34 }
  0x6c   :  { %v523_v44 = vmul.u32 %v516_v25, %v507_v37  ;;  %v526_v11 = vadd.s32 1, %v2496_v5  ;;  %v581_v56 = vadd.s32 1, %v1904_v33  ;;  %v2523_v54 = vadd.f32 %v2472_v59, %v2412_v23 }
  0x6d   :  { %v2527_v26 = vadd.f32 %v2482_v10, %v2417_v27  ;;  %v237_v0 = vshll.u32 %v236_v60, 23  ;;  %v433_v62 = vclz %v1897_v24  ;;  %v2531_v53 = vadd.f32 %v2505_v38, %v2421_v4 }
  0x6e   :  { %v2535_v21 = vadd.f32 %v2215_v15, %v2425_v28  ;;  %vm525_vm9 = vc.u32 %v2508_v3, %v2495_v12  ;;  %vm582_vm10 = vcmp.gt.s32.totalorder %v581_v56, 0  ;;  %v234_v47 = vor.u32 %v233_v63, %v232_v8 }
  0x6f   :  { %v318_v23 = vadd.s32 %v2316_v40, %v2322_v46  ;;  %v527_v27 = vsel %vm525_vm9, %v526_v11, %v2496_v5  ;;  %v583_v60 = vsel %vm582_vm10, %v581_v56, 0  ;;  %v334_v25 = vsub.s32 32, %v333_v34 }
  0x70   :  { %v339_v41 = vadd.s32 127, %v338_v1  ;;  %v528_v9 = vadd.s32 %v527_v27, %v523_v44  ;;  %v585_v4 = vand.u32 31, %v583_v60  ;;  %v2544_v6 = vadd.f32 %v2218_v16, %v2429_v30 }
  0x71   :  { %v238_v15 = vor.u32 4788187, %v237_v0  ;;  %v1898_v28 = vadd.s32 4294967294, %v433_v62  ;;  %v3964_v39 = vand.u32 2147483647, %v2436_v42  ;;  %v2549_v14 = vadd.f32 %v2223_v18, %v2433_v32 }
  0x72   :  { %v2553_v40 = vadd.f32 %v2252_v43, %v2451_v48  ;;  %v529_v46 = vadd.s32 536870912, %v528_v9  ;;  %v586_v36 = vsub.s32 32, %v585_v4  ;;  %v2557_v7 = vadd.f32 %v2405_v13, %v2454_v50 }
  0x73   :  { %v2561_v16 = vadd.f32 %v2472_v59, %v2467_v2  ;;  %v241_v30 = vcvt.s32.f32 %v234_v47  ;;  %v335_v18 = vshll.u32 %v2367_v17, %v333_v34  ;;  %v336_v32 = vshrl.u32 %v318_v23, %v334_v25 }
  0x74   :  { %v340_v24 = vshll.u32 %v339_v41, 23  ;;  %v2565_v37 = vshrl.u32 %v529_v46, 30  ;;  %v239_v43 = vand.u32 2147483647, %v238_v15  ;;  %vm1899_vm11 = vcmp.lt.s32.totalorder %v1898_v28, 0 }
  0x75   :  { %3977 = vst [vmem:[#allocation10_spill] sm:$0xff] %v2561_v16  ;;  %v578_v48 = vand.u32 8388607, %v3964_v39  ;;  %v588_v13 = vshll.u32 %v3974_v49, %v585_v4  ;;  %v3978_v59 = vmov 2475754826   ;;  %v584_v17 = vshrl.u32 %v583_v60, 5 }
  0x76   :  { %v531_v50 = vshll.u32 %v2565_v37, 30  ;;  %v589_v2 = vshrl.u32 %v3978_v59, %v586_v36  ;;  %v591_v55 = vshll.u32 %v3978_v59, %v585_v4  ;;  %v3979_v57 = vmov 2131351028  }
  0x77   :  { %v592_v35 = vshrl.u32 %v3979_v57, %v586_v36  ;;  %v594_v34 = vshll.u32 %v3979_v57, %v585_v4  ;;  %v3980_v33 = vmov 2102212464   ;;  %v337_v1 = vor.u32 %v336_v32, %v335_v18 }
  0x78   :  { %v595_v8 = vshrl.u32 %v3980_v33, %v586_v36  ;;  %v597_v63 = vshll.u32 %v3980_v33, %v585_v4  ;;  %v341_v44 = vor.u32 4788187, %v340_v24  ;;  %v3981_v11 = vmov 920167782  }
  0x79   :  { %v598_v56 = vshrl.u32 %v3981_v11, %v586_v36  ;;  %v600_v0 = vshll.u32 %v3981_v11, %v585_v4  ;;  %v242_v62 = vmul.f32 %v241_v30, %v239_v43  ;;  %v348_v47 = vsub.s32 4, %v2352_v31 }
  0x7a   :  { %v579_v23 = vor.u32 8388608, %v578_v48  ;;  %v3982_v27 = vmov 1326507024   ;;  %vm161_vm12 = vcmp.lt.s32.totalorder %v2226_v19, 0  ;;  %v2583_v60 = vsel %vm1899_vm11, 0, %v1898_v28 }
  0x7b   :  { %v601_v25 = vshrl.u32 %v3982_v27, %v586_v36  ;;  %v2585_v41 = vsub.s32 %v528_v9, %v531_v50  ;;  %v590_v15 = vor.u32 %v589_v2, %v588_v13  ;;  %v593_v46 = vor.u32 %v592_v35, %v591_v55 }
  0x7c   :  { %v596_v18 = vor.u32 %v595_v8, %v594_v34  ;;  %v599_v32 = vor.u32 %v598_v56, %v597_v63  ;;  %vm603_vm13 = vcmp.lt.s32.totalorder %v584_v17, 1  ;;  %v342_v4 = vand.u32 2147483647, %v341_v44 }
  0x7d   :  { %v602_v24 = vor.u32 %v601_v25, %v600_v0  ;;  %v344_v30 = vcvt.s32.f32 %v337_v1  ;;  %v421_v43 = vadd.s32 %v2373_v29, %v2385_v51  ;;  %v587_v48 = vshrl.u32 %v3974_v49, %v586_v36 }
  0x7e   :  { %v441_v39 = vsub.s32 4294967266, %v2583_v60  ;;  %vm605_vm14 = vcmp.lt.s32.totalorder %v584_v17, 3  ;;  %vm606_vm15 = vcmp.lt.s32.totalorder %v584_v17, 4  ;;  %v619_v28 = vshll.u32 %v579_v23, 8 }
  0x7f   :  { %v534_v9 = vsub.s32 0, %v2585_v41  ;;  %vm604_vm0 = vcmp.lt.s32.totalorder %v584_v17, 2  ;;  %v608_v13 = vsel %vm606_vm15, %v596_v18, 2102212464  ;;  %v611_v50 = vsel %vm603_vm13, %v590_v15, %v593_v46 }
  0x80   :  { %v243_v2 = vxor.u32 2147483648, %v242_v62  ;;  %v612_v55 = vsel %vm606_vm15, %v599_v32, 920167782  ;;  %v615_v35 = vsel %vm603_vm13, %v593_v46, %v596_v18  ;;  %v616_v34 = vsel %vm606_vm15, %v602_v24, 1326507024 }
  0x81   :  { %v607_v29 = vsel %vm603_vm13, %v587_v48, %v590_v15  ;;  %v609_v51 = vsel %vm605_vm14, %v593_v46, %v608_v13  ;;  %v613_v36 = vsel %vm605_vm14, %v596_v18, %v612_v55  ;;  %v617_v8 = vsel %vm605_vm14, %v599_v32, %v616_v34 }
  0x82   :  { %v345_v63 = vmul.f32 %v344_v30, %v342_v4  ;;  %v437_v1 = vsub.s32 32, %v2583_v60  ;;  %v614_v44 = vsel %vm604_vm0, %v611_v50, %v613_v36  ;;  %v618_v56 = vsel %vm604_vm0, %v615_v35, %v617_v8 }
  0x83   :  { %v442_v0 = vadd.s32 127, %v441_v39  ;;  %v1901_v23 = vmin.u32 %v534_v9, %v2585_v41  ;;  %v2599_v25 = vmul.u32.u64.low %v619_v28, %v618_v56  ;;  %v2600_v5 = vmul.u32.u64.high %v619_v28, %v618_v56, %v2599_v25 }
  0x84   :  { %v610_v24 = vsel %vm604_vm0, %v607_v29, %v609_v51  ;;  %v2603_v16 = vmul.u32.u64.low %v619_v28, %v614_v44  ;;  %v2604_v15 = vmul.u32.u64.high %v619_v28, %v614_v44, %v2603_v16  ;;  %v677_v46 = vand.u32 2139095040, %v2523_v54 }
  0x85   :  { %v2610_v18 = vadd.f32 %v2482_v10, %v2512_v45  ;;  %v3983_v32 = vand.u32 2147483647, %v2226_v19  ;;  %v3986_v17 = vsub.s32 4, %v2329_v61  ;;  %vm264_vm2 = vcmp.lt.s32.totalorder %v2229_v20, 0 }
  0x86   :  { %v244_v30 = vsel %vm161_vm12, %v243_v2, %v242_v62  ;;  %v346_v48 = vxor.u32 2147483648, %v345_v63  ;;  %v349_v10 = vsel %vm264_vm2, %v348_v47, %v2352_v31  ;;  %v678_v45 = vshrl.u32 %v677_v46, 23 }
  0x87   :  { %vm2614_vm1 = vcmp.le.f32.partialorder %v3983_v32, 0.7853982  ;;  %v246_v4 = vsel %vm161_vm12, %v3986_v17, %v2329_v61  ;;  %v438_v9 = vshll.u32 %v2463_v52, %v2583_v60  ;;  %v439_v13 = vshrl.u32 %v421_v43, %v437_v1  ;;  %v3991_v43 = vld [vmem:[#allocation9_spill] sm:$0xff] }
  0x88   :  { %v626_v50 = vmul.u32 %v619_v28, %v610_v24  ;;  %vm628_vm3 = vc.u32 %v2600_v5, %v2603_v16  ;;  %v443_v61 = vshll.u32 %v442_v0, 23  ;;  %v536_v55 = vclz %v1901_v23 }
  0x89   :  { %v629_v35 = vadd.s32 1, %v2604_v15  ;;  %v1908_v34 = vadd.s32 4294967169, %v678_v45  ;;  %v2636_v62 = vadd.f32 %v2505_v38, %v2516_v58  ;;  %v248_v31 = vsel %vm2614_vm1, 0, %v246_v4 }
  0x8a   :  { %v3988_v47 = vand.u32 2147483647, %v2229_v20  ;;  %vm367_vm5 = vcmp.lt.s32.totalorder %v2233_v22, 0  ;;  %v247_v60 = vsel %vm2614_vm1, %v2226_v19, %v244_v30  ;;  %v451_v28 = vsub.s32 4, %v3991_v43 }
  0x8b   :  { %3987 = vst [vmem:[#allocation11_spill] sm:$0xff] %v2636_v62  ;;  %v630_v38 = vsel %vm628_vm3, %v629_v35, %v2604_v15  ;;  %v684_v58 = vadd.s32 1, %v1908_v34  ;;  %v440_v29 = vor.u32 %v439_v13, %v438_v9  ;;  %v3966_v36 = vand.u32 2147483647, %v2523_v54 }
  0x8c   :  { %vm2642_vm4 = vcmp.le.f32.partialorder %v3988_v47, 0.7853982  ;;  %v631_v51 = vadd.s32 %v630_v38, %v626_v50  ;;  %v347_v8 = vsel %vm264_vm2, %v346_v48, %v345_v63  ;;  %v444_v1 = vor.u32 4788187, %v443_v61 }
  0x8d   :  { %v351_v2 = vsel %vm2642_vm4, 0, %v349_v10  ;;  %v1902_v44 = vadd.s32 4294967294, %v536_v55  ;;  %vm685_vm6 = vcmp.gt.s32.totalorder %v684_v58, 0  ;;  %2026 = vcosq.f32 %v247_v60 }
  0x8e   :  { %v2657_v56 = vand.u32 3, %v248_v31  ;;  %v632_v0 = vadd.s32 536870912, %v631_v51  ;;  %v686_v23 = vsel %vm685_vm6, %v684_v58, 0  ;;  %2028 = vsinq.f32 %v247_v60 }
  0x8f   :  { %v2659_v25 = vand.u32 3, %v351_v2  ;;  %v2664_v24 = vsel %vm367_vm5, %v451_v28, %v3991_v43  ;;  %v688_v15 = vand.u32 31, %v686_v23  ;;  %v2669_v63 = vsel %vm2642_vm4, %v2229_v20, %v347_v8 }
  0x90   :  { %v447_v46 = vcvt.s32.f32 %v440_v29  ;;  %v2671_v32 = vshrl.u32 %v632_v0, 30  ;;  %v681_v39 = vand.u32 8388607, %v3966_v36  ;;  %v445_v17 = vand.u32 2147483647, %v444_v1 }
  0x91   :  { %vm1903_vm7 = vcmp.lt.s32.totalorder %v1902_v44, 0  ;;  %v689_v4 = vsub.s32 32, %v688_v15  ;;  %v780_v30 = vand.u32 2139095040, %v2527_v26  ;;  %v691_v10 = vshll.u32 %v3974_v49, %v688_v15 }
  0x92   :  { %v634_v48 = vshll.u32 %v2671_v32, 30  ;;  %v694_v45 = vshll.u32 %v3978_v59, %v688_v15  ;;  %v697_v9 = vshll.u32 %v3979_v57, %v688_v15  ;;  %v700_v55 = vshll.u32 %v3980_v33, %v688_v15 }
  0x93   :  { %v692_v13 = vshrl.u32 %v3978_v59, %v689_v4  ;;  %v695_v50 = vshrl.u32 %v3979_v57, %v689_v4  ;;  %v698_v61 = vshrl.u32 %v3980_v33, %v689_v4  ;;  %2030 = vcosq.f32 %v2669_v63 }
  0x94   :  { %v2685_v35 = vsub.s32 %v631_v51, %v634_v48  ;;  %v682_v34 = vor.u32 8388608, %v681_v39  ;;  %v701_v31 = vshrl.u32 %v3981_v11, %v689_v4  ;;  %v524_v47 = vadd.s32 %v2495_v12, %v2508_v3 }
  0x95   :  { %v2691_v52 = vsel %vm1903_vm7, 0, %v1902_v44  ;;  %v687_v60 = vshrl.u32 %v686_v23, 5  ;;  %v781_v43 = vshrl.u32 %v780_v30, 23  ;;  %v2693_v28 = vmul.f32 %v447_v46, %v445_v17 }
  0x96   :  { %v637_v38 = vsub.s32 0, %v2685_v35  ;;  %v693_v58 = vor.u32 %v692_v13, %v691_v10  ;;  %v696_v2 = vor.u32 %v695_v50, %v694_v45  ;;  %v699_v29 = vor.u32 %v698_v61, %v697_v9 }
  0x97   :  { %v702_v51 = vor.u32 %v701_v31, %v700_v55  ;;  %v703_v8 = vshll.u32 %v3981_v11, %v688_v15  ;;  %v704_v1 = vshrl.u32 %v3982_v27, %v689_v4  ;;  %v2027_v0 = vpop.eup %2026  ;;  %vm257_vm8 = vcmp.eq.s32.totalorder %v2657_v56, 2 }
  0x98   :  { %v544_v12 = vsub.s32 4294967266, %v2691_v52  ;;  %v1905_v3 = vmin.u32 %v637_v38, %v2685_v35  ;;  %v690_v44 = vshrl.u32 %v3974_v49, %v689_v4  ;;  %v722_v23 = vshll.u32 %v682_v34, 8  ;;  %v2029_v46 = vpop.eup %2028 }
  0x99   :  { %vm254_vm9 = vcmp.eq.s32.totalorder %v2657_v56, 0  ;;  %v3992_v39 = vand.u32 2147483647, %v2233_v22  ;;  %v705_v15 = vor.u32 %v704_v1, %v703_v8  ;;  %vm706_vm11 = vcmp.lt.s32.totalorder %v687_v60, 1 }
  0x9a   :  { %vm708_vm12 = vcmp.lt.s32.totalorder %v687_v60, 3  ;;  %v1912_v30 = vadd.s32 4294967169, %v781_v43  ;;  %v639_v48 = vclz %v1905_v3  ;;  %vm707_vm13 = vcmp.lt.s32.totalorder %v687_v60, 2 }
  0x9b   :  { %vm2705_vm10 = vcmp.le.f32.partialorder %v3992_v39, 0.7853982  ;;  %vm709_vm14 = vcmp.lt.s32.totalorder %v687_v60, 4  ;;  %v714_v10 = vsel %vm706_vm11, %v693_v58, %v696_v2  ;;  %v718_v9 = vsel %vm706_vm11, %v696_v2, %v699_v29 }
  0x9c   :  { %v711_v45 = vsel %vm709_vm14, %v699_v29, 2102212464  ;;  %v715_v4 = vsel %vm709_vm14, %v702_v51, 920167782  ;;  %v719_v13 = vsel %vm709_vm14, %v705_v15, 1326507024  ;;  %v710_v50 = vsel %vm706_vm11, %v690_v44, %v693_v58 }
  0x9d   :  { %v712_v61 = vsel %vm708_vm12, %v696_v2, %v711_v45  ;;  %v716_v55 = vsel %vm708_vm12, %v699_v29, %v715_v4  ;;  %v720_v34 = vsel %vm708_vm12, %v702_v51, %v719_v13  ;;  %v540_v31 = vsub.s32 32, %v2691_v52  ;;  %v2712_v43 = vpop.eup %2030 }
  0x9e   :  { %v717_v38 = vsel %vm707_vm13, %v714_v10, %v716_v55  ;;  %v721_v8 = vsel %vm707_vm13, %v718_v9, %v720_v34  ;;  %v787_v1 = vadd.s32 1, %v1912_v30  ;;  %v258_v3 = vxor.u32 2147483648, %v2027_v0 }
  0x9f   :  { %v545_v39 = vadd.s32 127, %v544_v12  ;;  %v2714_v36 = vmul.u32.u64.low %v722_v23, %v721_v8  ;;  %v2715_v62 = vmul.u32.u64.high %v722_v23, %v721_v8, %v2714_v36  ;;  %v713_v15 = vsel %vm707_vm13, %v710_v50, %v712_v61 }
  0xa0   :  { %v2718_v58 = vmul.u32.u64.low %v722_v23, %v717_v38  ;;  %v2719_v2 = vmul.u32.u64.high %v722_v23, %v717_v38, %v2718_v58  ;;  %vm788_vm15 = vcmp.gt.s32.totalorder %v787_v1, 0  ;;  %v255_v29 = vxor.u32 2147483648, %v2029_v46 }
  0xa1   :  { %2032 = vsinq.f32 %v2669_v63  ;;  %v1906_v51 = vadd.s32 4294967294, %v639_v48  ;;  %v789_v44 = vsel %vm788_vm15, %v787_v1, 0  ;;  %v449_v30 = vxor.u32 2147483648, %v2693_v28 }
  0xa2   :  { %v541_v12 = vshll.u32 %v2585_v41, %v2691_v52  ;;  %v542_v10 = vshrl.u32 %v524_v47, %v540_v31  ;;  %v791_v45 = vand.u32 31, %v789_v44  ;;  %v454_v36 = vsel %vm2705_vm10, 0, %v2664_v24 }
  0xa3   :  { %v546_v60 = vshll.u32 %v545_v39, 23  ;;  %v729_v4 = vmul.u32 %v722_v23, %v713_v15  ;;  %v3968_v9 = vand.u32 2147483647, %v2527_v26  ;;  %v2732_v63 = vsel %vm257_vm8, %v258_v3, %v2029_v46 }
  0xa4   :  { %vm731_vm0 = vc.u32 %v2715_v62, %v2718_v58  ;;  %v732_v48 = vadd.s32 1, %v2719_v2  ;;  %v792_v41 = vsub.s32 32, %v791_v45  ;;  %v2739_v47 = vsel %vm254_vm9, %v2027_v0, %v255_v29 }
  0xa5   :  { %vm1907_vm1 = vcmp.lt.s32.totalorder %v1906_v51, 0  ;;  %v794_v23 = vshll.u32 %v3974_v49, %v791_v45  ;;  %v450_v46 = vsel %vm367_vm5, %v449_v30, %v2693_v28  ;;  %v543_v13 = vor.u32 %v542_v10, %v541_v12 }
  0xa6   :  { %v733_v50 = vsel %vm731_vm0, %v732_v48, %v2719_v2  ;;  %v795_v61 = vshrl.u32 %v3978_v59, %v792_v41  ;;  %v547_v55 = vor.u32 4788187, %v546_v60  ;;  %v784_v0 = vand.u32 8388607, %v3968_v9 }
  0xa7   :  { %v734_v34 = vadd.s32 %v733_v50, %v729_v4  ;;  %v2750_v31 = vshrl.u32 %v789_v44, 5  ;;  %v2752_v38 = vsel %vm1907_vm1, 0, %v1906_v51  ;;  %v797_v8 = vshll.u32 %v3978_v59, %v791_v45 }
  0xa8   :  { %v798_v1 = vshrl.u32 %v3979_v57, %v792_v41  ;;  %v800_v28 = vshll.u32 %v3979_v57, %v791_v45  ;;  %v796_v39 = vor.u32 %v795_v61, %v794_v23  ;;  %v801_v15 = vshrl.u32 %v3980_v33, %v792_v41 }
  0xa9   :  { %v735_v3 = vadd.s32 536870912, %v734_v34  ;;  %v803_v2 = vshll.u32 %v3980_v33, %v791_v45  ;;  %v804_v30 = vshrl.u32 %v3981_v11, %v792_v41  ;;  %v806_v44 = vshll.u32 %v3981_v11, %v791_v45 }
  0xaa   :  { %v799_v29 = vor.u32 %v798_v1, %v797_v8  ;;  %v807_v51 = vshrl.u32 %v3982_v27, %v792_v41  ;;  %v548_v10 = vand.u32 2147483647, %v547_v55  ;;  %v550_v60 = vcvt.s32.f32 %v543_v13 }
  0xab   :  { %v2033_v12 = vpop.eup %2032  ;;  %v2762_v4 = vshrl.u32 %v735_v3, 30  ;;  %vm809_vm2 = vcmp.lt.s32.totalorder %v2750_v31, 1  ;;  %vm253_vm3 = vcmp.lt.s32.totalorder %v2657_v56, 2  ;;  %v647_v48 = vsub.s32 4294967266, %v2752_v38 }
  0xac   :  { %v785_v23 = vor.u32 8388608, %v784_v0  ;;  %v802_v50 = vor.u32 %v801_v15, %v800_v28  ;;  %v805_v61 = vor.u32 %v804_v30, %v803_v2  ;;  %vm357_vm4 = vcmp.eq.s32.totalorder %v2659_v25, 0 }
  0xad   :  { %vm360_vm5 = vcmp.eq.s32.totalorder %v2659_v25, 2  ;;  %v737_v45 = vshll.u32 %v2762_v4, 30  ;;  %v793_v55 = vshrl.u32 %v3974_v49, %v792_v41  ;;  %vm811_vm6 = vcmp.lt.s32.totalorder %v2750_v31, 3  ;;  %v3995_v41 = vld [vmem:[#allocation8_spill] sm:$0xff] }
  0xae   :  { %vm812_vm7 = vcmp.lt.s32.totalorder %v2750_v31, 4  ;;  %v808_v13 = vor.u32 %v807_v51, %v806_v44  ;;  %vm810_vm8 = vcmp.lt.s32.totalorder %v2750_v31, 2  ;;  %v817_v0 = vsel %vm809_vm2, %v796_v39, %v799_v29 }
  0xaf   :  { %v818_v8 = vsel %vm812_vm7, %v805_v61, 920167782  ;;  %v358_v1 = vxor.u32 2147483648, %v2033_v12  ;;  %v2781_v28 = vsel %vm2705_vm10, %v2233_v22, %v450_v46  ;;  %vm470_vm9 = vcmp.lt.s32.totalorder %v3995_v41, 0 }
  0xb0   :  { %v2784_v3 = vsub.s32 %v734_v34, %v737_v45  ;;  %v814_v15 = vsel %vm812_vm7, %v802_v50, 2102212464  ;;  %v627_v2 = vadd.s32 %v2603_v16, %v2600_v5  ;;  %v643_v30 = vsub.s32 32, %v2752_v38 }
  0xb1   :  { %v819_v44 = vsel %vm811_vm6, %v802_v50, %v818_v8  ;;  %v825_v51 = vshll.u32 %v785_v23, 8  ;;  %vm251_vm11 = vweird.f32 %v2226_v19  ;;  %vm356_vm12 = vcmp.lt.s32.totalorder %v2659_v25, 2 }
  0xb2   :  { %v551_v46 = vmul.f32 %v550_v60, %v548_v10  ;;  %v648_v9 = vadd.s32 127, %v647_v48  ;;  %v740_v34 = vsub.s32 0, %v2784_v3  ;;  %v820_v45 = vsel %vm810_vm8, %v817_v0, %v819_v44 }
  0xb3   :  { %v3996_v52 = vand.u32 2147483647, %v3995_v41  ;;  %v813_v5 = vsel %vm809_vm2, %v793_v55, %v796_v39  ;;  %v815_v23 = vsel %vm811_vm6, %v799_v29, %v814_v15  ;;  %v821_v10 = vsel %vm809_vm2, %v799_v29, %v802_v50 }
  0xb4   :  { %v822_v60 = vsel %vm812_vm7, %v808_v13, 1326507024  ;;  %2034 = vcosq.f32 %v2781_v28  ;;  %v554_v48 = vsub.s32 4, %v2565_v37  ;;  %v1909_v0 = vmin.u32 %v740_v34, %v2784_v3 }
  0xb5   :  { %vm2800_vm13 = vcmp.le.f32.partialorder %v3996_v52, 0.7853982  ;;  %v644_v52 = vshll.u32 %v2685_v35, %v2752_v38  ;;  %v645_v8 = vshrl.u32 %v627_v2, %v643_v30  ;;  %v823_v39 = vsel %vm811_vm6, %v805_v61, %v822_v60 }
  0xb6   :  { %v2819_v55 = vmul.u32.u64.low %v825_v51, %v820_v45  ;;  %v2820_v15 = vmul.u32.u64.high %v825_v51, %v820_v45, %v2819_v55  ;;  %vm354_vm14 = vweird.f32 %v2229_v20  ;;  %v742_v29 = vclz %v1909_v0 }
  0xb7   :  { %v816_v50 = vsel %vm810_vm8, %v813_v5, %v815_v23  ;;  %v824_v13 = vsel %vm810_vm8, %v821_v10, %v823_v39  ;;  %v883_v35 = vand.u32 2139095040, %v2531_v53  ;;  %v552_v38 = vxor.u32 2147483648, %v551_v46 }
  0xb8   :  { %v649_v2 = vshll.u32 %v648_v9, 23  ;;  %v2829_v30 = vmul.u32.u64.low %v825_v51, %v824_v13  ;;  %v2830_v44 = vmul.u32.u64.high %v825_v51, %v824_v13, %v2829_v30  ;;  %v260_v61 = vsel %vm253_vm3, %v2739_v47, %v2732_v63 }
  0xb9   :  { %v2840_v34 = vand.u32 3, %v454_v36  ;;  %v1910_v31 = vadd.s32 4294967294, %v742_v29  ;;  %v884_v45 = vshrl.u32 %v883_v35, 23  ;;  %v359_v9 = vsel %vm357_vm4, %v2712_v43, %v358_v1 }
  0xba   :  { %v3999_v5 = vxor.u32 2147483648, %v2712_v43  ;;  %v832_v10 = vmul.u32 %v825_v51, %v816_v50  ;;  %v835_v56 = vadd.s32 1, %v2820_v15  ;;  %v555_v24 = vsel %vm470_vm9, %v554_v48, %v2565_v37 }
  0xbb   :  { %v646_v17 = vor.u32 %v645_v8, %v644_v52  ;;  %vm1911_vm10 = vcmp.lt.s32.totalorder %v1910_v31, 0  ;;  %v1916_v36 = vadd.s32 4294967169, %v884_v45  ;;  %v553_v63 = vsel %vm470_vm9, %v552_v38, %v551_v46 }
  0xbc   :  { %v362_v23 = vsel %vm360_vm5, %v3999_v5, %v2033_v12  ;;  %v650_v47 = vor.u32 4788187, %v649_v2  ;;  %v745_v1 = vsel %vm1911_vm10, 0, %v1910_v31  ;;  %vm834_vm15 = vc.u32 %v2830_v44, %v2819_v55 }
  0xbd   :  { %v750_v43 = vsub.s32 4294967266, %v745_v1  ;;  %v836_v12 = vsel %vm834_vm15, %v835_v56, %v2820_v15  ;;  %v3970_v51 = vand.u32 2147483647, %v2531_v53  ;;  %v986_v60 = vand.u32 2139095040, %v2535_v21 }
  0xbe   :  { %v2862_v37 = vsel %vm251_vm11, nan, %v260_v61  ;;  %v363_v48 = vsel %vm356_vm12, %v359_v9, %v362_v23  ;;  %v837_v46 = vadd.s32 %v836_v12, %v832_v10  ;;  %v890_v52 = vadd.s32 1, %v1916_v36  ;;  %v2866_v0 = vpop.eup %2034 }
  0xbf   :  { %v556_v8 = vsel %vm2800_vm13, %v3995_v41, %v553_v63  ;;  %v557_v39 = vsel %vm2800_vm13, 0, %v555_v24  ;;  %v653_v15 = vcvt.s32.f32 %v646_v17  ;;  %v730_v19 = vadd.s32 %v2718_v58, %v2715_v62 }
  0xc0   :  { %v746_v29 = vsub.s32 32, %v745_v1  ;;  %v751_v50 = vadd.s32 127, %v750_v43  ;;  %v838_v13 = vadd.s32 536870912, %v837_v46  ;;  %vm891_vm0 = vcmp.gt.s32.totalorder %v890_v52, 0 }
  0xc1   :  { %v651_v25 = vand.u32 2147483647, %v650_v47  ;;  %v887_v35 = vand.u32 8388607, %v3970_v51  ;;  %v892_v38 = vsel %vm891_vm0, %v890_v52, 0  ;;  %v987_v2 = vshrl.u32 %v986_v60, 23 }
  0xc2   :  { %v2879_v30 = vsel %vm354_vm14, nan, %v363_v48  ;;  %2036 = vsinq.f32 %v2781_v28  ;;  %v2882_v16 = vshrl.u32 %v838_v13, 30  ;;  %v894_v61 = vand.u32 31, %v892_v38 }
  0xc3   :  { %v464_v62 = vxor.u32 2147483648, %v2866_v0  ;;  %2038 = vcosq.f32 %v556_v8  ;;  %v2885_v58 = vand.u32 3, %v557_v39  ;;  %v747_v31 = vshll.u32 %v2784_v3, %v745_v1 }
  0xc4   :  { %v748_v45 = vshrl.u32 %v730_v19, %v746_v29  ;;  %v752_v9 = vshll.u32 %v751_v50, 23  ;;  %v840_v5 = vshll.u32 %v2882_v16, 30  ;;  %v895_v23 = vsub.s32 32, %v894_v61 }
  0xc5   :  { %v654_v20 = vmul.f32 %v653_v15, %v651_v25  ;;  %v888_v10 = vor.u32 8388608, %v887_v35  ;;  %v893_v56 = vshrl.u32 %v892_v38, 5  ;;  %v1920_v24 = vadd.s32 4294967169, %v987_v2 }
  0xc6   :  { %v2889_v28 = vsub.s32 %v837_v46, %v840_v5  ;;  %v897_v17 = vshll.u32 %v3974_v49, %v894_v61  ;;  %v898_v36 = vshrl.u32 %v3978_v59, %v895_v23  ;;  %v900_v63 = vshll.u32 %v3978_v59, %v894_v61 }
  0xc7   :  { %vm463_vm1 = vcmp.eq.s32.totalorder %v2840_v34, 2  ;;  %vm573_vm2 = vcmp.lt.s32.totalorder %v2436_v42, 0  ;;  %v901_v3 = vshrl.u32 %v3979_v57, %v895_v23  ;;  %v903_v47 = vshll.u32 %v3979_v57, %v894_v61 }
  0xc8   :  { %v904_v1 = vshrl.u32 %v3980_v33, %v895_v23  ;;  %v906_v43 = vshll.u32 %v3980_v33, %v894_v61  ;;  %v749_v12 = vor.u32 %v748_v45, %v747_v31  ;;  %v753_v60 = vor.u32 4788187, %v752_v9 }
  0xc9   :  { %v843_v48 = vsub.s32 0, %v2889_v28  ;;  %v907_v46 = vshrl.u32 %v3981_v11, %v895_v23  ;;  %vm460_vm3 = vcmp.eq.s32.totalorder %v2840_v34, 0  ;;  %2040 = vsinq.f32 %v556_v8 }
  0xca   :  { %v655_v52 = vxor.u32 2147483648, %v654_v20  ;;  %v657_v39 = vsub.s32 4, %v2671_v32  ;;  %v909_v15 = vshll.u32 %v3981_v11, %v894_v61  ;;  %v896_v29 = vshrl.u32 %v3974_v49, %v895_v23 }
  0xcb   :  { %v1913_v19 = vmin.u32 %v843_v48, %v2889_v28  ;;  %v899_v50 = vor.u32 %v898_v36, %v897_v17  ;;  %v902_v13 = vor.u32 %v901_v3, %v900_v63  ;;  %v4000_v25 = vand.u32 2147483647, %v2436_v42 }
  0xcc   :  { %v905_v38 = vor.u32 %v904_v1, %v903_v47  ;;  %v908_v2 = vor.u32 %v907_v46, %v906_v43  ;;  %v910_v8 = vshrl.u32 %v3982_v27, %v895_v23  ;;  %vm912_vm5 = vcmp.lt.s32.totalorder %v893_v56, 1  ;;  %v2037_v31 = vpop.eup %2036 }
  0xcd   :  { %vm2909_vm4 = vcmp.le.f32.partialorder %v4000_v25, 0.7853982  ;;  %vm459_vm6 = vcmp.lt.s32.totalorder %v2840_v34, 2  ;;  %v754_v61 = vand.u32 2147483647, %v753_v60  ;;  %v756_v45 = vcvt.s32.f32 %v749_v12  ;;  %v2915_v17 = vpop.eup %2038 }
  0xce   :  { %v928_v9 = vshll.u32 %v888_v10, 8  ;;  %v993_v5 = vadd.s32 1, %v1920_v24  ;;  %v845_v36 = vclz %v1913_v19  ;;  %v911_v63 = vor.u32 %v910_v8, %v909_v15 }
  0xcf   :  { %vm914_vm7 = vcmp.lt.s32.totalorder %v893_v56, 3  ;;  %vm915_vm8 = vcmp.lt.s32.totalorder %v893_v56, 4  ;;  %vm566_vm9 = vcmp.eq.s32.totalorder %v2885_v58, 2  ;;  %vm913_vm11 = vcmp.lt.s32.totalorder %v893_v56, 2 }
  0xd0   :  { %v916_v3 = vsel %vm912_vm5, %v896_v29, %v899_v50  ;;  %v917_v23 = vsel %vm915_vm8, %v905_v38, 2102212464  ;;  %v920_v47 = vsel %vm912_vm5, %v899_v50, %v902_v13  ;;  %v921_v43 = vsel %vm915_vm8, %v908_v2, 920167782 }
  0xd1   :  { %v918_v1 = vsel %vm914_vm7, %v902_v13, %v917_v23  ;;  %v924_v12 = vsel %vm912_vm5, %v902_v13, %v905_v38  ;;  %v925_v10 = vsel %vm915_vm8, %v911_v63, 1326507024  ;;  %v461_v24 = vxor.u32 2147483648, %v2037_v31 }
  0xd2   :  { %v757_v60 = vmul.f32 %v756_v45, %v754_v61  ;;  %v922_v48 = vsel %vm914_vm7, %v905_v38, %v921_v43  ;;  %v926_v46 = vsel %vm914_vm7, %v908_v2, %v925_v10  ;;  %v658_v15 = vsel %vm573_vm2, %v657_v39, %v2671_v32 }
  0xd3   :  { %v1914_v19 = vadd.s32 4294967294, %v845_v36  ;;  %v923_v25 = vsel %vm913_vm11, %v920_v47, %v922_v48  ;;  %v927_v29 = vsel %vm913_vm11, %v924_v12, %v926_v46  ;;  %v465_v50 = vsel %vm463_vm1, %v464_v62, %v2037_v31  ;;  %v2933_v2 = vpop.eup %2040 }
  0xd4   :  { %v656_v13 = vsel %vm573_vm2, %v655_v52, %v654_v20  ;;  %v919_v38 = vsel %vm913_vm11, %v916_v3, %v918_v1  ;;  %vm994_vm12 = vcmp.gt.s32.totalorder %v993_v5, 0  ;;  %v462_v45 = vsel %vm460_vm3, %v2866_v0, %v461_v24 }
  0xd5   :  { %v2935_v8 = vmul.u32.u64.low %v928_v9, %v927_v29  ;;  %v2936_v32 = vmul.u32.u64.high %v928_v9, %v927_v29, %v2935_v8  ;;  %v2938_v39 = vmul.u32.u64.low %v928_v9, %v923_v25  ;;  %v2939_v61 = vmul.u32.u64.high %v928_v9, %v923_v25, %v2938_v39 }
  0xd6   :  { %v660_v62 = vsel %vm2909_vm4, 0, %v658_v15  ;;  %v758_v20 = vxor.u32 2147483648, %v757_v60  ;;  %v995_v56 = vsel %vm994_vm12, %v993_v5, 0  ;;  %v567_v52 = vxor.u32 2147483648, %v2915_v17 }
  0xd7   :  { %vm676_vm13 = vcmp.lt.s32.totalorder %v2523_v54, 0  ;;  %vm1915_vm14 = vcmp.lt.s32.totalorder %v1914_v19, 0  ;;  %v997_v31 = vand.u32 31, %v995_v56  ;;  %v659_v36 = vsel %vm2909_vm4, %v2436_v42, %v656_v13 }
  0xd8   :  { %v4003_v63 = vand.u32 2147483647, %v2523_v54  ;;  %v935_v0 = vmul.u32 %v928_v9, %v919_v38  ;;  %v3969_v23 = vand.u32 2147483647, %v2535_v21  ;;  %v2961_v5 = vsel %vm459_vm6, %v462_v45, %v465_v50 }
  0xd9   :  { %v2963_v47 = vand.u32 3, %v660_v62  ;;  %vm937_vm15 = vc.u32 %v2936_v32, %v2938_v39  ;;  %v938_v35 = vadd.s32 1, %v2939_v61  ;;  %v564_v1 = vxor.u32 2147483648, %v2933_v2 }
  0xda   :  { %vm2954_vm10 = vcmp.le.f32.partialorder %v4003_v63, 0.7853982  ;;  %v759_v43 = vsel %vm676_vm13, %v758_v20, %v757_v60  ;;  %v848_v12 = vsel %vm1915_vm14, 0, %v1914_v19  ;;  %v998_v9 = vsub.s32 32, %v997_v31 }
  0xdb   :  { %v2974_v34 = vsel %vm566_vm9, %v567_v52, %v2933_v2  ;;  %2042 = vcosq.f32 %v659_v36  ;;  %v939_v24 = vsel %vm937_vm15, %v938_v35, %v2939_v61  ;;  %v833_v48 = vadd.s32 %v2819_v55, %v2830_v44 }
  0xdc   :  { %2044 = vsinq.f32 %v659_v36  ;;  %v940_v46 = vadd.s32 %v939_v24, %v935_v0  ;;  %v990_v60 = vand.u32 8388607, %v3969_v23  ;;  %v762_v15 = vsel %vm2954_vm10, %v2523_v54, %v759_v43 }
  0xdd   :  { %v853_v19 = vsub.s32 4294967266, %v848_v12  ;;  %v2985_v25 = vshrl.u32 %v995_v56, 5  ;;  %v1000_v29 = vshll.u32 %v3974_v49, %v997_v31  ;;  %v1001_v13 = vshrl.u32 %v3978_v59, %v998_v9 }
  0xde   :  { %v941_v50 = vadd.s32 536870912, %v940_v46  ;;  %v1003_v38 = vshll.u32 %v3978_v59, %v997_v31  ;;  %v1004_v55 = vshrl.u32 %v3979_v57, %v998_v9  ;;  %v1006_v44 = vshll.u32 %v3979_v57, %v997_v31 }
  0xdf   :  { %v1007_v8 = vshrl.u32 %v3980_v33, %v998_v9  ;;  %v1009_v61 = vshll.u32 %v3980_v33, %v997_v31  ;;  %v1010_v45 = vshrl.u32 %v3981_v11, %v998_v9  ;;  %v849_v62 = vsub.s32 32, %v848_v12 }
  0xe0   :  { %v2995_v20 = vshrl.u32 %v941_v50, 30  ;;  %v991_v56 = vor.u32 8388608, %v990_v60  ;;  %v1012_v52 = vshll.u32 %v3981_v11, %v997_v31  ;;  %vm563_vm0 = vcmp.eq.s32.totalorder %v2885_v58, 0 }
  0xe1   :  { %2046 = vcosq.f32 %v762_v15  ;;  %v850_v36 = vshll.u32 %v2889_v28, %v848_v12  ;;  %v854_v63 = vadd.s32 127, %v853_v19  ;;  %v1013_v0 = vshrl.u32 %v3982_v27, %v998_v9 }
  0xe2   :  { %v943_v35 = vshll.u32 %v2995_v20, 30  ;;  %v1002_v43 = vor.u32 %v1001_v13, %v1000_v29  ;;  %v1005_v24 = vor.u32 %v1004_v55, %v1003_v38  ;;  %v1011_v23 = vor.u32 %v1010_v45, %v1009_v61 }
  0xe3   :  { %v1008_v51 = vor.u32 %v1007_v8, %v1006_v44  ;;  %v1014_v10 = vor.u32 %v1013_v0, %v1012_v52  ;;  %vm1015_vm1 = vcmp.lt.s32.totalorder %v2985_v25, 1  ;;  %vm1018_vm2 = vcmp.lt.s32.totalorder %v2985_v25, 4 }
  0xe4   :  { %v851_v31 = vshrl.u32 %v833_v48, %v849_v62  ;;  %v3004_v60 = vsub.s32 %v940_v46, %v943_v35  ;;  %v999_v50 = vshrl.u32 %v3974_v49, %v998_v9  ;;  %vm1017_vm3 = vcmp.lt.s32.totalorder %v2985_v25, 3 }
  0xe5   :  { %v2043_v28 = vpop.eup %2042  ;;  %vm562_vm4 = vcmp.lt.s32.totalorder %v2885_v58, 2  ;;  %v855_v12 = vshll.u32 %v854_v63, 23  ;;  %v1020_v19 = vsel %vm1018_vm2, %v1008_v51, 2102212464  ;;  %v3011_v29 = vshll.u32 %v991_v56, 8 }
  0xe6   :  { %v1089_v13 = vand.u32 2139095040, %v2544_v6  ;;  %v2045_v38 = vpop.eup %2044  ;;  %vm666_vm5 = vcmp.eq.s32.totalorder %v2963_v47, 0  ;;  %vm669_vm6 = vcmp.eq.s32.totalorder %v2963_v47, 2  ;;  %v946_v9 = vsub.s32 0, %v3004_v60 }
  0xe7   :  { %vm1016_vm7 = vcmp.lt.s32.totalorder %v2985_v25, 2  ;;  %v1023_v48 = vsel %vm1015_vm1, %v1002_v43, %v1005_v24  ;;  %v1024_v46 = vsel %vm1018_vm2, %v1011_v23, 920167782  ;;  %2048 = vsinq.f32 %v762_v15 }
  0xe8   :  { %v1025_v55 = vsel %vm1017_vm3, %v1008_v51, %v1024_v46  ;;  %v1027_v44 = vsel %vm1015_vm1, %v1005_v24, %v1008_v51  ;;  %v1028_v8 = vsel %vm1018_vm2, %v1014_v10, 1326507024  ;;  %v852_v61 = vor.u32 %v851_v31, %v850_v36 }
  0xe9   :  { %v1917_v45 = vmin.u32 %v946_v9, %v3004_v60  ;;  %v1019_v62 = vsel %vm1015_vm1, %v999_v50, %v1002_v43  ;;  %v1021_v56 = vsel %vm1017_vm3, %v1005_v24, %v1020_v19  ;;  %vm457_vm8 = vweird.f32 %v2233_v22 }
  0xea   :  { %vm560_vm9 = vweird.f32 %v3995_v41  ;;  %vm779_vm11 = vcmp.lt.s32.totalorder %v2527_v26, 0  ;;  %v856_v15 = vor.u32 4788187, %v855_v12  ;;  %v1026_v51 = vsel %vm1016_vm7, %v1023_v48, %v1025_v55 }
  0xeb   :  { %v1029_v10 = vsel %vm1017_vm3, %v1011_v23, %v1028_v8  ;;  %v1090_v52 = vshrl.u32 %v1089_v13, 23  ;;  %v948_v36 = vclz %v1917_v45  ;;  %v3047_v43 = vpop.eup %2046  ;;  %v1022_v24 = vsel %vm1016_vm7, %v1019_v62, %v1021_v56 }
  0xec   :  { %v1030_v63 = vsel %vm1016_vm7, %v1027_v44, %v1029_v10  ;;  %v3043_v0 = vmul.u32.u64.low %v3011_v29, %v1026_v51  ;;  %v3044_v35 = vmul.u32.u64.high %v3011_v29, %v1026_v51, %v3043_v0  ;;  %v565_v12 = vsel %vm563_vm0, %v2915_v17, %v564_v1 }
  0xed   :  { %v3052_v31 = vmul.u32.u64.low %v3011_v29, %v1030_v63  ;;  %v3053_v50 = vmul.u32.u64.high %v3011_v29, %v1030_v63, %v3052_v31  ;;  %v1924_v23 = vadd.s32 4294967169, %v1090_v52  ;;  %v670_v19 = vxor.u32 2147483648, %v2043_v28 }
  0xee   :  { %v4006_v13 = vsub.s32 4, %v2762_v4  ;;  %v4007_v25 = vand.u32 2147483647, %v2527_v26  ;;  %v1918_v46 = vadd.s32 4294967294, %v948_v36  ;;  %v667_v55 = vxor.u32 2147483648, %v2045_v38 }
  0xef   :  { %v859_v2 = vcvt.s32.f32 %v852_v61  ;;  %v863_v44 = vsub.s32 4, %v2882_v16  ;;  %v1096_v8 = vadd.s32 1, %v1924_v23  ;;  %v857_v17 = vand.u32 2147483647, %v856_v15 }
  0xf0   :  { %v761_v9 = vsel %vm676_vm13, %v4006_v13, %v2762_v4  ;;  %vm3067_vm12 = vcmp.le.f32.partialorder %v4007_v25, 0.7853982  ;;  %vm1919_vm14 = vcmp.lt.s32.totalorder %v1918_v46, 0  ;;  %v1038_v1 = vmul.u32 %v3011_v29, %v1022_v24 }
  0xf1   :  { %v1041_v45 = vadd.s32 1, %v3044_v35  ;;  %vm665_vm13 = vcmp.lt.s32.totalorder %v2963_v47, 2  ;;  %v936_v4 = vadd.s32 %v2938_v39, %v2936_v32  ;;  %v951_v62 = vsel %vm1919_vm14, 0, %v1918_v46  ;;  %v3084_v51 = vpop.eup %2048 }
  0xf2   :  { %vm1040_vm15 = vc.u32 %v3053_v50, %v3043_v0  ;;  %v569_v61 = vsel %vm562_vm4, %v565_v12, %v2974_v34  ;;  %v763_v56 = vsel %vm2954_vm10, 0, %v761_v9  ;;  %v952_v15 = vsub.s32 32, %v951_v62 }
  0xf3   :  { %v956_v29 = vsub.s32 4294967266, %v951_v62  ;;  %v668_v10 = vsel %vm666_vm5, %v2043_v28, %v667_v55  ;;  %v671_v32 = vsel %vm669_vm6, %v670_v19, %v2045_v38  ;;  %v1042_v39 = vsel %vm1040_vm15, %v1041_v45, %v3044_v35 }
  0xf4   :  { %vm1097_vm0 = vcmp.gt.s32.totalorder %v1096_v8, 0  ;;  %v860_v52 = vmul.f32 %v859_v2, %v857_v17  ;;  %v3094_v58 = vsel %vm779_vm11, %v863_v44, %v2882_v16  ;;  %v1043_v34 = vadd.s32 %v1042_v39, %v1038_v1 }
  0xf5   :  { %v957_v3 = vadd.s32 127, %v956_v29  ;;  %v953_v36 = vshll.u32 %v3004_v60, %v951_v62  ;;  %v954_v63 = vshrl.u32 %v936_v4, %v952_v15  ;;  %v1086_v24 = vand.u32 2147483647, %v2544_v6 }
  0xf6   :  { %v1098_v28 = vsel %vm1097_vm0, %v1096_v8, 0  ;;  %v3101_v38 = vsel %vm457_vm8, nan, %v2961_v5  ;;  %v3105_v35 = vsel %vm560_vm9, nan, %v569_v61  ;;  %v1044_v16 = vadd.s32 536870912, %v1043_v34 }
  0xf7   :  { %v958_v31 = vshll.u32 %v957_v3, 23  ;;  %v3109_v23 = vsel %vm665_vm13, %v668_v10, %v671_v32  ;;  %v3111_v60 = vand.u32 3, %v763_v56  ;;  %v866_v12 = vsel %vm3067_vm12, 0, %v3094_v58 }
  0xf8   :  { %v1100_v19 = vand.u32 31, %v1098_v28  ;;  %v770_v22 = vxor.u32 2147483648, %v3084_v51  ;;  %v773_v5 = vxor.u32 2147483648, %v3047_v43  ;;  %v861_v41 = vxor.u32 2147483648, %v860_v52 }
  0xf9   :  { %v3118_v13 = vshrl.u32 %v1044_v16, 30  ;;  %v955_v9 = vor.u32 %v954_v63, %v953_v36  ;;  %v1093_v47 = vand.u32 8388607, %v1086_v24  ;;  %v1192_v46 = vand.u32 2139095040, %v2549_v14 }
  0xfa   :  { %v1101_v25 = vsub.s32 32, %v1100_v19  ;;  %v959_v55 = vor.u32 4788187, %v958_v31  ;;  %v1099_v44 = vshrl.u32 %v1098_v28, 5  ;;  %v1103_v8 = vshll.u32 %v3974_v49, %v1100_v19 }
  0xfb   :  { %v1046_v2 = vshll.u32 %v3118_v13, 30  ;;  %v1106_v1 = vshll.u32 %v3978_v59, %v1100_v19  ;;  %v1112_v4 = vshll.u32 %v3980_v33, %v1100_v19  ;;  %v1109_v61 = vshll.u32 %v3979_v57, %v1100_v19 }
  0xfc   :  { %v1104_v17 = vshrl.u32 %v3978_v59, %v1101_v25  ;;  %v1107_v45 = vshrl.u32 %v3979_v57, %v1101_v25  ;;  %v1110_v56 = vshrl.u32 %v3980_v33, %v1101_v25  ;;  %v1113_v15 = vshrl.u32 %v3981_v11, %v1101_v25 }
  0xfd   :  { %v3129_v62 = vsub.s32 %v1043_v34, %v1046_v2  ;;  %v862_v29 = vsel %vm779_vm11, %v861_v41, %v860_v52  ;;  %v966_v10 = vsub.s32 4, %v2995_v20  ;;  %v1094_v32 = vor.u32 8388608, %v1093_v47 }
  0xfe   :  { %v1193_v39 = vshrl.u32 %v1192_v46, 23  ;;  %v960_v3 = vand.u32 2147483647, %v959_v55  ;;  %v962_v36 = vcvt.s32.f32 %v955_v9  ;;  %v1105_v28 = vor.u32 %v1104_v17, %v1103_v8 }
  0xff   :  { %v1049_v63 = vsub.s32 0, %v3129_v62  ;;  %vm663_vm10 = vweird.f32 %v2436_v42  ;;  %vm772_vm1 = vcmp.eq.s32.totalorder %v3111_v60, 2  ;;  %v1108_v34 = vor.u32 %v1107_v45, %v1106_v1 }
 0x100   :  { %v1114_v31 = vor.u32 %v1113_v15, %v1112_v4  ;;  %v1115_v16 = vshll.u32 %v3981_v11, %v1100_v19  ;;  %v1116_v2 = vshrl.u32 %v3982_v27, %v1101_v25  ;;  %vm769_vm2 = vcmp.eq.s32.totalorder %v3111_v60, 0 }
 0x101   :  { %v1921_v52 = vmin.u32 %v1049_v63, %v3129_v62  ;;  %v1102_v41 = vshrl.u32 %v3974_v49, %v1101_v25  ;;  %v1111_v9 = vor.u32 %v1110_v56, %v1109_v61  ;;  %vm1118_vm3 = vcmp.lt.s32.totalorder %v1099_v44, 1 }
 0x102   :  { %v1117_v47 = vor.u32 %v1116_v2, %v1115_v16  ;;  %vm1120_vm4 = vcmp.lt.s32.totalorder %v1099_v44, 3  ;;  %v1189_v46 = vand.u32 2147483647, %v2549_v14  ;;  %v1928_v55 = vadd.s32 4294967169, %v1193_v39 }
 0x103   :  { %vm882_vm5 = vcmp.lt.s32.totalorder %v2531_v53, 0  ;;  %v1051_v8 = vclz %v1921_v52  ;;  %vm1119_vm6 = vcmp.lt.s32.totalorder %v1099_v44, 2  ;;  %vm1121_vm7 = vcmp.lt.s32.totalorder %v1099_v44, 4 }
 0x104   :  { %v1134_v19 = vshll.u32 %v1094_v32, 8  ;;  %v963_v17 = vmul.f32 %v962_v36, %v960_v3  ;;  %v1123_v1 = vsel %vm1121_vm7, %v1111_v9, 2102212464  ;;  %v1126_v45 = vsel %vm1118_vm3, %v1105_v28, %v1108_v34 }
 0x105   :  { %v1127_v4 = vsel %vm1121_vm7, %v1114_v31, 920167782  ;;  %v1922_v15 = vadd.s32 4294967294, %v1051_v8  ;;  %v1122_v25 = vsel %vm1118_vm3, %v1102_v41, %v1105_v28  ;;  %v1130_v56 = vsel %vm1118_vm3, %v1108_v34, %v1111_v9 }
 0x106   :  { %v1128_v61 = vsel %vm1120_vm4, %v1111_v9, %v1127_v4  ;;  %v4010_v39 = vand.u32 2147483647, %v2531_v53  ;;  %v1124_v32 = vsel %vm1120_vm4, %v1108_v34, %v1123_v1  ;;  %v1131_v36 = vsel %vm1121_vm7, %v1117_v47, 1326507024 }
 0x107   :  { %v1129_v3 = vsel %vm1119_vm6, %v1126_v45, %v1128_v61  ;;  %v1199_v16 = vadd.s32 1, %v1928_v55  ;;  %vm1923_vm9 = vcmp.lt.s32.totalorder %v1922_v15, 0  ;;  %v1132_v2 = vsel %vm1120_vm4, %v1114_v31, %v1131_v36 }
 0x108   :  { %vm3153_vm8 = vcmp.le.f32.partialorder %v4010_v39, 0.7853982  ;;  %v3160_v28 = vmul.u32.u64.low %v1134_v19, %v1129_v3  ;;  %v3161_v52 = vmul.u32.u64.high %v1134_v19, %v1129_v3, %v3160_v28  ;;  %v865_v41 = vsel %vm3067_vm12, %v2527_v26, %v862_v29 }
 0x109   :  { %v1054_v9 = vsel %vm1923_vm9, 0, %v1922_v15  ;;  %v1133_v8 = vsel %vm1119_vm6, %v1130_v56, %v1132_v2  ;;  %vm1200_vm11 = vcmp.gt.s32.totalorder %v1199_v16, 0  ;;  %v964_v34 = vxor.u32 2147483648, %v963_v17 }
 0x10a   :  { %v1125_v1 = vsel %vm1119_vm6, %v1122_v25, %v1124_v32  ;;  %v1196_v47 = vand.u32 8388607, %v1189_v46  ;;  %v1201_v55 = vsel %vm1200_vm11, %v1199_v16, 0  ;;  %v1059_v31 = vsub.s32 4294967266, %v1054_v9 }
 0x10b   :  { %v3171_v45 = vmul.u32.u64.low %v1134_v19, %v1133_v8  ;;  %v3172_v4 = vmul.u32.u64.high %v1134_v19, %v1133_v8, %v3171_v45  ;;  %v1203_v61 = vand.u32 31, %v1201_v55  ;;  %v3177_v29 = vsel %vm663_vm10, nan, %v3109_v23 }
 0x10c   :  { %v3184_v44 = vsel %vm772_vm1, %v773_v5, %v3084_v51  ;;  %v3190_v15 = vand.u32 3, %v866_v12  ;;  %v1144_v25 = vadd.s32 1, %v3161_v52  ;;  %v771_v42 = vsel %vm769_vm2, %v3047_v43, %v770_v22 }
 0x10d   :  { %2050 = vcosq.f32 %v865_v41  ;;  %v1141_v23 = vmul.u32 %v1134_v19, %v1125_v1  ;;  %v1204_v56 = vsub.s32 32, %v1203_v61  ;;  %v967_v48 = vsel %vm882_vm5, %v966_v10, %v2995_v20 }
 0x10e   :  { %2052 = vsinq.f32 %v865_v41  ;;  %v1039_v58 = vadd.s32 %v3043_v0, %v3053_v50  ;;  %v1197_v12 = vor.u32 8388608, %v1196_v47  ;;  %vm768_vm12 = vcmp.lt.s32.totalorder %v3111_v60, 2 }
 0x10f   :  { %v965_v51 = vsel %vm882_vm5, %v964_v34, %v963_v17  ;;  %v1055_v43 = vsub.s32 32, %v1054_v9  ;;  %v1060_v22 = vadd.s32 127, %v1059_v31  ;;  %vm1143_vm14 = vc.u32 %v3172_v4, %v3160_v28 }
 0x110   :  { %v1145_v5 = vsel %vm1143_vm14, %v1144_v25, %v3161_v52  ;;  %v1206_v19 = vshll.u32 %v3974_v49, %v1203_v61  ;;  %v1209_v20 = vshll.u32 %v3978_v59, %v1203_v61  ;;  %v1215_v10 = vshll.u32 %v3980_v33, %v1203_v61 }
 0x111   :  { %v1146_v0 = vadd.s32 %v1145_v5, %v1141_v23  ;;  %v3214_v50 = vshrl.u32 %v1201_v55, 5  ;;  %v1207_v39 = vshrl.u32 %v3978_v59, %v1204_v56  ;;  %v1210_v17 = vshrl.u32 %v3979_v57, %v1204_v56 }
 0x112   :  { %v968_v32 = vsel %vm3153_vm8, %v2531_v53, %v965_v51  ;;  %v1212_v3 = vshll.u32 %v3979_v57, %v1203_v61  ;;  %v1213_v36 = vshrl.u32 %v3980_v33, %v1204_v56  ;;  %v1216_v16 = vshrl.u32 %v3981_v11, %v1204_v56 }
 0x113   :  { %v1056_v2 = vshll.u32 %v3129_v62, %v1054_v9  ;;  %v1057_v52 = vshrl.u32 %v1039_v58, %v1055_v43  ;;  %v1061_v41 = vshll.u32 %v1060_v22, 23  ;;  %v1147_v8 = vadd.s32 536870912, %v1146_v0 }
 0x114   :  { %vm766_vm13 = vweird.f32 %v2523_v54  ;;  %v1208_v34 = vor.u32 %v1207_v39, %v1206_v19  ;;  %v1211_v1 = vor.u32 %v1210_v17, %v1209_v20  ;;  %v1217_v47 = vor.u32 %v1216_v16, %v1215_v10 }
 0x115   :  { %v1218_v55 = vshll.u32 %v3981_v11, %v1203_v61  ;;  %v969_v31 = vsel %vm3153_vm8, 0, %v967_v48  ;;  %v3229_v45 = vshrl.u32 %v1147_v8, 30  ;;  %v1219_v25 = vshrl.u32 %v3982_v27, %v1204_v56 }
 0x116   :  { %vm1221_vm15 = vcmp.lt.s32.totalorder %v3214_v50, 1  ;;  %2054 = vcosq.f32 %v968_v32  ;;  %v1214_v62 = vor.u32 %v1213_v36, %v1212_v3  ;;  %vm1224_vm0 = vcmp.lt.s32.totalorder %v3214_v50, 4 }
 0x117   :  { %v3234_v9 = vshll.u32 %v1197_v12, 8  ;;  %v2051_v23 = vpop.eup %2050  ;;  %vm872_vm10 = vcmp.eq.s32.totalorder %v3190_v15, 0  ;;  %v1058_v58 = vor.u32 %v1057_v52, %v1056_v2  ;;  %v1062_v61 = vor.u32 4788187, %v1061_v41 }
 0x118   :  { %v1149_v63 = vshll.u32 %v3229_v45, 30  ;;  %vm1223_vm1 = vcmp.lt.s32.totalorder %v3214_v50, 3  ;;  %v2053_v48 = vpop.eup %2052  ;;  %vm985_vm2 = vcmp.lt.s32.totalorder %v2535_v21, 0  ;;  %v1220_v51 = vor.u32 %v1219_v25, %v1218_v55 }
 0x119   :  { %vm1222_vm3 = vcmp.lt.s32.totalorder %v3214_v50, 2  ;;  %v1229_v43 = vsel %vm1221_vm15, %v1208_v34, %v1211_v1  ;;  %v1230_v12 = vsel %vm1224_vm0, %v1217_v47, 920167782  ;;  %vm875_vm4 = vcmp.eq.s32.totalorder %v3190_v15, 2 }
 0x11a   :  { %2056 = vsinq.f32 %v968_v32  ;;  %v3246_v22 = vsub.s32 %v1146_v0, %v1149_v63  ;;  %v1205_v5 = vshrl.u32 %v3974_v49, %v1204_v56  ;;  %v775_v19 = vsel %vm768_vm12, %v771_v42, %v3184_v44 }
 0x11b   :  { %v3252_v20 = vand.u32 3, %v969_v31  ;;  %v1226_v10 = vsel %vm1224_vm0, %v1214_v62, 2102212464  ;;  %v1231_v39 = vsel %vm1223_vm1, %v1214_v62, %v1230_v12  ;;  %v4013_v17 = vand.u32 2147483647, %v2535_v21 }
 0x11c   :  { %v1063_v0 = vand.u32 2147483647, %v1062_v61  ;;  %v1065_v56 = vcvt.s32.f32 %v1058_v58  ;;  %v1152_v3 = vsub.s32 0, %v3246_v22  ;;  %v1232_v60 = vsel %vm1222_vm3, %v1229_v43, %v1231_v39 }
 0x11d   :  { %vm3260_vm5 = vcmp.le.f32.partialorder %v4013_v17, 0.7853982  ;;  %v1233_v44 = vsel %vm1221_vm15, %v1211_v1, %v1214_v62  ;;  %v1234_v42 = vsel %vm1224_vm0, %v1220_v51, 1326507024  ;;  %vm871_vm6 = vcmp.lt.s32.totalorder %v3190_v15, 2 }
 0x11e   :  { %v3272_v36 = vmul.u32.u64.low %v3234_v9, %v1232_v60  ;;  %v3273_v16 = vmul.u32.u64.high %v3234_v9, %v1232_v60, %v3272_v36  ;;  %v1069_v2 = vsub.s32 4, %v3118_v13  ;;  %v1925_v52 = vmin.u32 %v1152_v3, %v3246_v22 }
 0x11f   :  { %v1225_v41 = vsel %vm1221_vm15, %v1205_v5, %v1208_v34  ;;  %v1227_v8 = vsel %vm1223_vm1, %v1211_v1, %v1226_v10  ;;  %v873_v55 = vxor.u32 2147483648, %v2053_v48  ;;  %v876_v31 = vxor.u32 2147483648, %v2051_v23 }
 0x120   :  { %v1235_v25 = vsel %vm1223_vm1, %v1217_v47, %v1234_v42  ;;  %v1295_v62 = vand.u32 2139095040, %v2553_v40  ;;  %v3288_v58 = vsel %vm766_vm13, nan, %v775_v19  ;;  %v1066_v61 = vmul.f32 %v1065_v56, %v1063_v0  ;;  %v2055_v34 = vpop.eup %2054 }
 0x121   :  { %v1154_v63 = vclz %v1925_v52  ;;  %v1236_v51 = vsel %vm1222_vm3, %v1233_v44, %v1235_v25  ;;  %v1228_v1 = vsel %vm1222_vm3, %v1225_v41, %v1227_v8  ;;  %vm975_vm7 = vcmp.eq.s32.totalorder %v3252_v20, 0 }
 0x122   :  { %v3295_v43 = vmul.u32.u64.low %v3234_v9, %v1236_v51  ;;  %v3296_v12 = vmul.u32.u64.high %v3234_v9, %v1236_v51, %v3295_v43  ;;  %v1296_v47 = vshrl.u32 %v1295_v62, 23  ;;  %vm978_vm8 = vcmp.eq.s32.totalorder %v3252_v20, 2 }
 0x123   :  { %v1070_v54 = vsel %vm985_vm2, %v1069_v2, %v3118_v13  ;;  %v1926_v5 = vadd.s32 4294967294, %v1154_v63  ;;  %v874_v19 = vsel %vm872_vm10, %v2051_v23, %v873_v55  ;;  %v877_v50 = vsel %vm875_vm4, %v876_v31, %v2053_v48 }
 0x124   :  { %vm1088_vm9 = vcmp.lt.s32.totalorder %v2544_v6, 0  ;;  %v1247_v10 = vadd.s32 1, %v3273_v16  ;;  %v1932_v39 = vadd.s32 4294967169, %v1296_v47  ;;  %v2057_v17 = vpop.eup %2056  ;;  %v1067_v0 = vxor.u32 2147483648, %v1066_v61 }
 0x125   :  { %v1142_v56 = vadd.s32 %v3160_v28, %v3172_v4  ;;  %vm1927_vm11 = vcmp.lt.s32.totalorder %v1926_v5, 0  ;;  %v1244_v13 = vmul.u32 %v3234_v9, %v1228_v1  ;;  %v1072_v3 = vsel %vm3260_vm5, 0, %v1070_v54 }
 0x126   :  { %v1157_v23 = vsel %vm1927_vm11, 0, %v1926_v5  ;;  %vm1246_vm12 = vc.u32 %v3296_v12, %v3272_v36  ;;  %v1302_v48 = vadd.s32 1, %v1932_v39  ;;  %v979_v60 = vxor.u32 2147483648, %v2055_v34 }
 0x127   :  { %v1158_v44 = vsub.s32 32, %v1157_v23  ;;  %v1159_v42 = vshll.u32 %v3246_v22, %v1157_v23  ;;  %v1162_v2 = vsub.s32 4294967266, %v1157_v23  ;;  %v976_v52 = vxor.u32 2147483648, %v2057_v17 }
 0x128   :  { %v1172_v41 = vsub.s32 4, %v3229_v45  ;;  %v1248_v28 = vsel %vm1246_vm12, %v1247_v10, %v3273_v16  ;;  %vm1303_vm14 = vcmp.gt.s32.totalorder %v1302_v48, 0  ;;  %v1068_v4 = vsel %vm985_vm2, %v1067_v0, %v1066_v61 }
 0x129   :  { %vm3323_vm13 = vcmp.le.f32.partialorder %v1086_v24, 0.7853982  ;;  %v1160_v8 = vshrl.u32 %v1142_v56, %v1158_v44  ;;  %v1163_v55 = vadd.s32 127, %v1162_v2  ;;  %v1249_v31 = vadd.s32 %v1248_v28, %v1244_v13 }
 0x12a   :  { %v3329_v22 = vsel %vm871_vm6, %v874_v19, %v877_v50  ;;  %v1292_v25 = vand.u32 2147483647, %v2553_v40  ;;  %v1304_v16 = vsel %vm1303_vm14, %v1302_v48, 0  ;;  %v1398_v62 = vand.u32 2139095040, %v2557_v7 }
 0x12b   :  { %v3333_v63 = vand.u32 3, %v1072_v3  ;;  %v1161_v61 = vor.u32 %v1160_v8, %v1159_v42  ;;  %v1164_v51 = vshll.u32 %v1163_v55, 23  ;;  %v1250_v24 = vadd.s32 536870912, %v1249_v31 }
 0x12c   :  { %v3337_v1 = vsel %vm975_vm7, %v2055_v34, %v976_v52  ;;  %v3341_v43 = vsel %vm978_vm8, %v979_v60, %v2057_v17  ;;  %v1071_v15 = vsel %vm3260_vm5, %v2535_v21, %v1068_v4  ;;  %v1306_v47 = vand.u32 31, %v1304_v16 }
 0x12d   :  { %v1165_v54 = vor.u32 4788187, %v1164_v51  ;;  %v1168_v5 = vcvt.s32.f32 %v1161_v61  ;;  %v3349_v19 = vsel %vm1088_vm9, %v1172_v41, %v3229_v45  ;;  %v3351_v50 = vshrl.u32 %v1250_v24, 30 }
 0x12e   :  { %v1299_v34 = vand.u32 8388607, %v1292_v25  ;;  %v3355_v10 = vshrl.u32 %v1304_v16, 5  ;;  %v1307_v39 = vsub.s32 32, %v1306_v47  ;;  %v1399_v17 = vshrl.u32 %v1398_v62, 23 }
 0x12f   :  { %v1166_v0 = vand.u32 2147483647, %v1165_v54  ;;  %v1252_v32 = vshll.u32 %v3351_v50, 30  ;;  %v1309_v56 = vshll.u32 %v3974_v49, %v1306_v47  ;;  %v1312_v13 = vshll.u32 %v3978_v59, %v1306_v47 }
 0x130   :  { %v1310_v3 = vshrl.u32 %v3978_v59, %v1307_v39  ;;  %v1313_v45 = vshrl.u32 %v3979_v57, %v1307_v39  ;;  %v1315_v23 = vshll.u32 %v3979_v57, %v1306_v47  ;;  %v1318_v48 = vshll.u32 %v3980_v33, %v1306_v47 }
 0x131   :  { %v1169_v60 = vmul.f32 %v1168_v5, %v1166_v0  ;;  %v3364_v44 = vsub.s32 %v1249_v31, %v1252_v32  ;;  %v1316_v42 = vshrl.u32 %v3980_v33, %v1307_v39  ;;  %v1319_v2 = vshrl.u32 %v3981_v11, %v1307_v39 }
 0x132   :  { %2058 = vcosq.f32 %v1071_v15  ;;  %v1175_v52 = vsel %vm3323_vm13, 0, %v3349_v19  ;;  %v1300_v41 = vor.u32 8388608, %v1299_v34  ;;  %v1936_v28 = vadd.s32 4294967169, %v1399_v17 }
 0x133   :  { %2060 = vsinq.f32 %v1071_v15  ;;  %v1255_v4 = vsub.s32 0, %v3364_v44  ;;  %v1311_v8 = vor.u32 %v1310_v3, %v1309_v56  ;;  %v1314_v55 = vor.u32 %v1313_v45, %v1312_v13 }
 0x134   :  { %vm869_vm15 = vweird.f32 %v2527_v26  ;;  %v1170_v31 = vxor.u32 2147483648, %v1169_v60  ;;  %v1320_v16 = vor.u32 %v1319_v2, %v1318_v48  ;;  %v1321_v62 = vshll.u32 %v3981_v11, %v1306_v47 }
 0x135   :  { %v1322_v61 = vshrl.u32 %v3982_v27, %v1307_v39  ;;  %vm974_vm0 = vcmp.lt.s32.totalorder %v3252_v20, 2  ;;  %v1929_v51 = vmin.u32 %v1255_v4, %v3364_v44  ;;  %v1308_v24 = vshrl.u32 %v3974_v49, %v1307_v39 }
 0x136   :  { %v1317_v54 = vor.u32 %v1316_v42, %v1315_v23  ;;  %vm1324_vm10 = vcmp.lt.s32.totalorder %v3355_v10, 1  ;;  %vm1326_vm1 = vcmp.lt.s32.totalorder %v3355_v10, 3  ;;  %v1340_v5 = vshll.u32 %v1300_v41, 8 }
 0x137   :  { %v1323_v15 = vor.u32 %v1322_v61, %v1321_v62  ;;  %v1405_v19 = vadd.s32 1, %v1936_v28  ;;  %v1245_v34 = vadd.s32 %v3272_v36, %v3296_v12  ;;  %v1257_v47 = vclz %v1929_v51 }
 0x138   :  { %vm1325_vm2 = vcmp.lt.s32.totalorder %v3355_v10, 2  ;;  %vm1327_vm3 = vcmp.lt.s32.totalorder %v3355_v10, 4  ;;  %v1171_v17 = vsel %vm1088_vm9, %v1170_v31, %v1169_v60  ;;  %v1332_v0 = vsel %vm1324_vm10, %v1311_v8, %v1314_v55 }
 0x139   :  { %v1329_v39 = vsel %vm1327_vm3, %v1317_v54, 2102212464  ;;  %v1333_v32 = vsel %vm1327_vm3, %v1320_v16, 920167782  ;;  %v1930_v56 = vadd.s32 4294967294, %v1257_v47  ;;  %v1328_v13 = vsel %vm1324_vm10, %v1308_v24, %v1311_v8 }
 0x13a   :  { %v1334_v36 = vsel %vm1326_vm1, %v1317_v54, %v1333_v32  ;;  %v1336_v12 = vsel %vm1324_vm10, %v1314_v55, %v1317_v54  ;;  %v1330_v3 = vsel %vm1326_vm1, %v1314_v55, %v1329_v39  ;;  %v1337_v23 = vsel %vm1327_vm3, %v1323_v15, 1326507024 }
 0x13b   :  { %v1335_v45 = vsel %vm1325_vm2, %v1332_v0, %v1334_v36  ;;  %vm1406_vm4 = vcmp.gt.s32.totalorder %v1405_v19, 0  ;;  %vm972_vm5 = vweird.f32 %v2531_v53  ;;  %vm1931_vm6 = vcmp.lt.s32.totalorder %v1930_v56, 0 }
 0x13c   :  { %v1338_v48 = vsel %vm1326_vm1, %v1320_v16, %v1337_v23  ;;  %v3401_v60 = vmul.u32.u64.low %v1340_v5, %v1335_v45  ;;  %v3402_v42 = vmul.u32.u64.high %v1340_v5, %v1335_v45, %v3401_v60  ;;  %v3405_v2 = vpop.eup %2058  ;;  %v1260_v41 = vsel %vm1931_vm6, 0, %v1930_v56 }
 0x13d   :  { %v1339_v28 = vsel %vm1325_vm2, %v1336_v12, %v1338_v48  ;;  %v1395_v4 = vand.u32 2147483647, %v2557_v7  ;;  %v1407_v8 = vsel %vm1406_vm4, %v1405_v19, 0  ;;  %v3410_v55 = vpop.eup %2060  ;;  %v1261_v31 = vsub.s32 32, %v1260_v41 }
 0x13e   :  { %v1262_v62 = vshll.u32 %v3364_v44, %v1260_v41  ;;  %v1265_v61 = vsub.s32 4294967266, %v1260_v41  ;;  %v1331_v16 = vsel %vm1325_vm2, %v1328_v13, %v1330_v3  ;;  %v1174_v51 = vsel %vm3323_vm13, %v2544_v6, %v1171_v17 }
 0x13f   :  { %v3418_v24 = vmul.u32.u64.low %v1340_v5, %v1339_v28  ;;  %v3419_v54 = vmul.u32.u64.high %v1340_v5, %v1339_v28, %v3418_v24  ;;  %v1409_v15 = vand.u32 31, %v1407_v8  ;;  %v3424_v19 = vsel %vm869_vm15, nan, %v3329_v22 }
 0x140   :  { %v1263_v47 = vshrl.u32 %v1245_v34, %v1261_v31  ;;  %v1266_v39 = vadd.s32 127, %v1265_v61  ;;  %v1350_v44 = vadd.s32 1, %v3402_v42  ;;  %v981_v10 = vsel %vm974_vm0, %v3337_v1, %v3341_v43 }
 0x141   :  { %v3431_v9 = vand.u32 3, %v1175_v52  ;;  %v1347_v17 = vmul.u32 %v1340_v5, %v1331_v16  ;;  %v1410_v0 = vsub.s32 32, %v1409_v15  ;;  %2062 = vcosq.f32 %v1174_v51 }
 0x142   :  { %v1264_v32 = vor.u32 %v1263_v47, %v1262_v62  ;;  %v1267_v56 = vshll.u32 %v1266_v39, 23  ;;  %v1402_v26 = vand.u32 8388607, %v1395_v4  ;;  %vm1078_vm7 = vcmp.eq.s32.totalorder %v3333_v63, 0 }
 0x143   :  { %2064 = vsinq.f32 %v1174_v51  ;;  %vm1349_vm8 = vc.u32 %v3419_v54, %v3401_v60  ;;  %v3438_v22 = vshrl.u32 %v1407_v8, 5  ;;  %v1412_v20 = vshll.u32 %v3974_v49, %v1409_v15 }
 0x144   :  { %v1268_v1 = vor.u32 4788187, %v1267_v56  ;;  %v1351_v43 = vsel %vm1349_vm8, %v1350_v44, %v3402_v42  ;;  %v1415_v52 = vshll.u32 %v3978_v59, %v1409_v15  ;;  %v1421_v5 = vshll.u32 %v3980_v33, %v1409_v15 }
 0x145   :  { %v1352_v34 = vadd.s32 %v1351_v43, %v1347_v17  ;;  %v1413_v13 = vshrl.u32 %v3978_v59, %v1410_v0  ;;  %v1416_v36 = vshrl.u32 %v3979_v57, %v1410_v0  ;;  %v1418_v12 = vshll.u32 %v3979_v57, %v1409_v15 }
 0x146   :  { %v1269_v3 = vand.u32 2147483647, %v1268_v1  ;;  %v1271_v45 = vcvt.s32.f32 %v1264_v32  ;;  %v1419_v23 = vshrl.u32 %v3980_v33, %v1410_v0  ;;  %v1422_v48 = vshrl.u32 %v3981_v11, %v1410_v0 }
 0x147   :  { %v3451_v42 = vsel %vm972_vm5, nan, %v981_v10  ;;  %vm1081_vm9 = vcmp.eq.s32.totalorder %v3333_v63, 2  ;;  %vm1191_vm11 = vcmp.lt.s32.totalorder %v2549_v14, 0  ;;  %v1353_v41 = vadd.s32 536870912, %v1352_v34 }
 0x148   :  { %v1424_v28 = vshll.u32 %v3981_v11, %v1409_v15  ;;  %v1403_v8 = vor.u32 8388608, %v1402_v26  ;;  %v1414_v31 = vor.u32 %v1413_v13, %v1412_v20  ;;  %v1417_v62 = vor.u32 %v1416_v36, %v1415_v52 }
 0x149   :  { %v1423_v61 = vor.u32 %v1422_v48, %v1421_v5  ;;  %v1082_v16 = vxor.u32 2147483648, %v3405_v2  ;;  %v3457_v51 = vshrl.u32 %v1353_v41, 30  ;;  %v1425_v24 = vshrl.u32 %v3982_v27, %v1410_v0 }
 0x14a   :  { %vm1427_vm12 = vcmp.lt.s32.totalorder %v3438_v22, 1  ;;  %vm1077_vm14 = vcmp.lt.s32.totalorder %v3333_v63, 2  ;;  %v1079_v53 = vxor.u32 2147483648, %v3410_v55  ;;  %vm1181_vm13 = vcmp.eq.s32.totalorder %v3431_v9, 0 }
 0x14b   :  { %vm1184_vm15 = vcmp.eq.s32.totalorder %v3431_v9, 2  ;;  %v1272_v15 = vmul.f32 %v1271_v45, %v1269_v3  ;;  %v1420_v47 = vor.u32 %v1419_v23, %v1418_v12  ;;  %vm1430_vm0 = vcmp.lt.s32.totalorder %v3438_v22, 4  ;;  %v2063_v32 = vpop.eup %2062 }
 0x14c   :  { %vm3468_vm10 = vcmp.le.f32.partialorder %v1189_v46, 0.7853982  ;;  %v1355_v44 = vshll.u32 %v3457_v51, 30  ;;  %v1411_v10 = vshrl.u32 %v3974_v49, %v1410_v0  ;;  %v1426_v17 = vor.u32 %v1425_v24, %v1424_v28 }
 0x14d   :  { %vm1429_vm1 = vcmp.lt.s32.totalorder %v3438_v22, 3  ;;  %vm1428_vm2 = vcmp.lt.s32.totalorder %v3438_v22, 2  ;;  %v1435_v56 = vsel %vm1427_vm12, %v1414_v31, %v1417_v62  ;;  %v1436_v26 = vsel %vm1430_vm0, %v1423_v61, 920167782  ;;  %v2065_v20 = vpop.eup %2064 }
 0x14e   :  { %v1443_v46 = vshll.u32 %v1403_v8, 8  ;;  %v1083_v1 = vsel %vm1081_vm9, %v1082_v16, %v3410_v55  ;;  %vm1180_vm3 = vcmp.lt.s32.totalorder %v3431_v9, 2  ;;  %v1275_v0 = vsub.s32 4, %v3351_v50 }
 0x14f   :  { %v3485_v43 = vsub.s32 %v1352_v34, %v1355_v44  ;;  %v1432_v52 = vsel %vm1430_vm0, %v1420_v47, 2102212464  ;;  %v1080_v5 = vsel %vm1078_vm7, %v3405_v2, %v1079_v53  ;;  %v1273_v13 = vxor.u32 2147483648, %v1272_v15 }
 0x150   :  { %v1437_v36 = vsel %vm1429_vm1, %v1420_v47, %v1436_v26  ;;  %v1440_v55 = vsel %vm1430_vm0, %v1426_v17, 1326507024  ;;  %v1431_v34 = vsel %vm1427_vm12, %v1411_v10, %v1414_v31  ;;  %v1439_v45 = vsel %vm1427_vm12, %v1417_v62, %v1420_v47  ;;  %v4022_v47 = vld [vmem:[#allocation10_spill] sm:$0xff] }
 0x151   :  { %v1358_v12 = vsub.s32 0, %v3485_v43  ;;  %v1438_v3 = vsel %vm1428_vm2, %v1435_v56, %v1437_v36  ;;  %v1433_v2 = vsel %vm1429_vm1, %v1417_v62, %v1432_v52  ;;  %v1441_v23 = vsel %vm1429_vm1, %v1423_v61, %v1440_v55 }
 0x152   :  { %v3507_v48 = vmul.u32.u64.low %v1443_v46, %v1438_v3  ;;  %v3508_v41 = vmul.u32.u64.high %v1443_v46, %v1438_v3, %v3507_v48  ;;  %vm1075_vm4 = vweird.f32 %v2535_v21  ;;  %v1182_v28 = vxor.u32 2147483648, %v2065_v20 }
 0x153   :  { %v1185_v8 = vxor.u32 2147483648, %v2063_v32  ;;  %v1276_v31 = vsel %vm1191_vm11, %v1275_v0, %v3351_v50  ;;  %vm3517_vm5 = vcmp.le.f32.partialorder %v1292_v25, 0.7853982  ;;  %v1933_v62 = vmin.u32 %v1358_v12, %v3485_v43 }
 0x154   :  { %vm1178_vm6 = vweird.f32 %v2544_v6  ;;  %v1274_v61 = vsel %vm1191_vm11, %v1273_v13, %v1272_v15  ;;  %v1378_v24 = vsub.s32 4, %v3457_v51  ;;  %v1442_v53 = vsel %vm1428_vm2, %v1439_v45, %v1441_v23 }
 0x155   :  { %v1501_v50 = vand.u32 2139095040, %v4022_v47  ;;  %v1360_v44 = vclz %v1933_v62  ;;  %v1434_v25 = vsel %vm1428_vm2, %v1431_v34, %v1433_v2  ;;  %vm1294_vm7 = vcmp.lt.s32.totalorder %v2553_v40, 0 }
 0x156   :  { %v3531_v10 = vmul.u32.u64.low %v1443_v46, %v1442_v53  ;;  %v3532_v17 = vmul.u32.u64.high %v1443_v46, %v1442_v53, %v3531_v10  ;;  %v1453_v56 = vadd.s32 1, %v3508_v41  ;;  %v1498_v15 = vand.u32 2147483647, %v4022_v47 }
 0x157   :  { %v1502_v26 = vshrl.u32 %v1501_v50, 23  ;;  %v1084_v0 = vsel %vm1077_vm14, %v1080_v5, %v1083_v1  ;;  %v1183_v52 = vsel %vm1181_vm13, %v2063_v32, %v1182_v28  ;;  %v1186_v22 = vsel %vm1184_vm15, %v1185_v8, %v2065_v20 }
 0x158   :  { %v1934_v13 = vadd.s32 4294967294, %v1360_v44  ;;  %v1277_v36 = vsel %vm3468_vm10, %v2549_v14, %v1274_v61  ;;  %v1278_v55 = vsel %vm3468_vm10, 0, %v1276_v31  ;;  %v1450_v12 = vmul.u32 %v1443_v46, %v1434_v25 }
 0x159   :  { %v1940_v34 = vadd.s32 4294967169, %v1502_v26  ;;  %v1348_v63 = vadd.s32 %v3401_v60, %v3419_v54  ;;  %v1379_v32 = vsel %vm1294_vm7, %v1378_v24, %v3457_v51  ;;  %vm1452_vm9 = vc.u32 %v3532_v17, %v3507_v48 }
 0x15a   :  { %vm1935_vm8 = vcmp.lt.s32.totalorder %v1934_v13, 0  ;;  %v1187_v20 = vsel %vm1180_vm3, %v1183_v52, %v1186_v22  ;;  %v1454_v39 = vsel %vm1452_vm9, %v1453_v56, %v3508_v41  ;;  %2066 = vcosq.f32 %v1277_v36 }
 0x15b   :  { %v1363_v1 = vsel %vm1935_vm8, 0, %v1934_v13  ;;  %v1508_v5 = vadd.s32 1, %v1940_v34  ;;  %v1381_v54 = vsel %vm3517_vm5, 0, %v1379_v32  ;;  %v1455_v45 = vadd.s32 %v1454_v39, %v1450_v12 }
 0x15c   :  { %v1364_v46 = vsub.s32 32, %v1363_v1  ;;  %v1365_v3 = vshll.u32 %v3485_v43, %v1363_v1  ;;  %v1368_v60 = vsub.s32 4294967266, %v1363_v1  ;;  %v1505_v51 = vand.u32 8388607, %v1498_v15 }
 0x15d   :  { %vm1509_vm11 = vcmp.gt.s32.totalorder %v1508_v5, 0  ;;  %v1604_v28 = vand.u32 2139095040, %v2610_v18  ;;  %v3566_v41 = vsel %vm1075_vm4, nan, %v1084_v0  ;;  %2068 = vsinq.f32 %v1277_v36 }
 0x15e   :  { %v1366_v2 = vshrl.u32 %v1348_v63, %v1364_v46  ;;  %v1369_v9 = vadd.s32 127, %v1368_v60  ;;  %v1510_v23 = vsel %vm1509_vm11, %v1508_v5, 0  ;;  %v1456_v43 = vadd.s32 536870912, %v1455_v45 }
 0x15f   :  { %v1512_v8 = vand.u32 31, %v1510_v23  ;;  %v3570_v31 = vsel %vm1178_vm6, nan, %v1187_v20  ;;  %v3572_v62 = vand.u32 3, %v1278_v55  ;;  %v3574_v53 = vand.u32 3, %v1381_v54 }
 0x160   :  { %v1367_v61 = vor.u32 %v1366_v2, %v1365_v3  ;;  %v1370_v24 = vshll.u32 %v1369_v9, 23  ;;  %v3576_v50 = vshrl.u32 %v1456_v43, 30  ;;  %v1601_v21 = vand.u32 2147483647, %v2610_v18 }
 0x161   :  { %v1513_v44 = vsub.s32 32, %v1512_v8  ;;  %v1506_v56 = vor.u32 8388608, %v1505_v51  ;;  %v1605_v26 = vshrl.u32 %v1604_v28, 23  ;;  %v1511_v6 = vshrl.u32 %v1510_v23, 5 }
 0x162   :  { %v1371_v25 = vor.u32 4788187, %v1370_v24  ;;  %v1374_v10 = vcvt.s32.f32 %v1367_v61  ;;  %v1458_v0 = vshll.u32 %v3576_v50, 30  ;;  %v1515_v52 = vshll.u32 %v3974_v49, %v1512_v8 }
 0x163   :  { %v1516_v22 = vshrl.u32 %v3978_v59, %v1513_v44  ;;  %v1518_v36 = vshll.u32 %v3978_v59, %v1512_v8  ;;  %v1519_v55 = vshrl.u32 %v3979_v57, %v1513_v44  ;;  %v1524_v12 = vshll.u32 %v3980_v33, %v1512_v8 }
 0x164   :  { %v1372_v13 = vand.u32 2147483647, %v1371_v25  ;;  %v3585_v34 = vsub.s32 %v1455_v45, %v1458_v0  ;;  %v1521_v63 = vshll.u32 %v3979_v57, %v1512_v8  ;;  %v1522_v32 = vshrl.u32 %v3980_v33, %v1513_v44  ;;  %v3590_v1 = vpop.eup %2066 }
 0x165   :  { %v1525_v20 = vshrl.u32 %v3981_v11, %v1513_v44  ;;  %v1451_v5 = vadd.s32 %v3507_v48, %v3532_v17  ;;  %v3594_v46 = vshll.u32 %v1506_v56, 8  ;;  %v3598_v3 = vand.u32 8388607, %v1601_v21 }
 0x166   :  { %v1375_v39 = vmul.f32 %v1374_v10, %v1372_v13  ;;  %v1461_v60 = vsub.s32 0, %v3585_v34  ;;  %v1517_v54 = vor.u32 %v1516_v22, %v1515_v52  ;;  %v1527_v45 = vshll.u32 %v3981_v11, %v1512_v8 }
 0x167   :  { %v1944_v51 = vadd.s32 4294967169, %v1605_v26  ;;  %v1520_v9 = vor.u32 %v1519_v55, %v1518_v36  ;;  %v1526_v23 = vor.u32 %v1525_v20, %v1524_v12  ;;  %v1528_v28 = vshrl.u32 %v3982_v27, %v1513_v44  ;;  %v2069_v43 = vpop.eup %2068 }
 0x168   :  { %v1376_v2 = vxor.u32 2147483648, %v1375_v39  ;;  %v1937_v48 = vmin.u32 %v1461_v60, %v3585_v34  ;;  %v1514_v17 = vshrl.u32 %v3974_v49, %v1513_v44  ;;  %v1523_v61 = vor.u32 %v1522_v32, %v1521_v63 }
 0x169   :  { %vm1530_vm12 = vcmp.lt.s32.totalorder %v1511_v6, 1  ;;  %vm1284_vm14 = vcmp.eq.s32.totalorder %v3572_v62, 0  ;;  %vm1287_vm13 = vcmp.eq.s32.totalorder %v3572_v62, 2  ;;  %v1288_v24 = vxor.u32 2147483648, %v3590_v1 }
 0x16a   :  { %v1529_v8 = vor.u32 %v1528_v28, %v1527_v45  ;;  %vm1532_vm15 = vcmp.lt.s32.totalorder %v1511_v6, 3  ;;  %vm1533_vm0 = vcmp.lt.s32.totalorder %v1511_v6, 4  ;;  %v1377_v25 = vsel %vm1294_vm7, %v1376_v2, %v1375_v39 }
 0x16b   :  { %v1463_v10 = vclz %v1937_v48  ;;  %vm1531_vm10 = vcmp.lt.s32.totalorder %v1511_v6, 2  ;;  %v1535_v56 = vsel %vm1533_vm0, %v1523_v61, 2102212464  ;;  %v1285_v26 = vxor.u32 2147483648, %v2069_v43 }
 0x16c   :  { %v1538_v44 = vsel %vm1530_vm12, %v1517_v54, %v1520_v9  ;;  %v1539_v0 = vsel %vm1533_vm0, %v1526_v23, 920167782  ;;  %v1611_v52 = vadd.s32 1, %v1944_v51  ;;  %v1534_v13 = vsel %vm1530_vm12, %v1514_v17, %v1517_v54 }
 0x16d   :  { %v1938_v22 = vadd.s32 4294967294, %v1463_v10  ;;  %v1536_v36 = vsel %vm1532_vm15, %v1520_v9, %v1535_v56  ;;  %v1540_v55 = vsel %vm1532_vm15, %v1523_v61, %v1539_v0  ;;  %v1380_v12 = vsel %vm3517_vm5, %v2553_v40, %v1377_v25 }
 0x16e   :  { %v1541_v63 = vsel %vm1531_vm10, %v1538_v44, %v1540_v55  ;;  %v1542_v32 = vsel %vm1530_vm12, %v1520_v9, %v1523_v61  ;;  %v1543_v20 = vsel %vm1533_vm0, %v1529_v8, 1326507024  ;;  %vm1397_vm1 = vcmp.lt.s32.totalorder %v2557_v7, 0 }
 0x16f   :  { %vm1939_vm2 = vcmp.lt.s32.totalorder %v1938_v22, 0  ;;  %v1544_v39 = vsel %vm1532_vm15, %v1526_v23, %v1543_v20  ;;  %v3625_v60 = vmul.u32.u64.low %v3594_v46, %v1541_v63  ;;  %v3626_v54 = vmul.u32.u64.high %v3594_v46, %v1541_v63, %v3625_v60 }
 0x170   :  { %v1466_v45 = vsel %vm1939_vm2, 0, %v1938_v22  ;;  %v1537_v16 = vsel %vm1531_vm10, %v1534_v13, %v1536_v36  ;;  %v1545_v51 = vsel %vm1531_vm10, %v1542_v32, %v1544_v39  ;;  %vm1612_vm3 = vcmp.gt.s32.totalorder %v1611_v52, 0 }
 0x171   :  { %vm1283_vm4 = vcmp.lt.s32.totalorder %v3572_v62, 2  ;;  %v1467_v2 = vsub.s32 32, %v1466_v45  ;;  %v1468_v9 = vshll.u32 %v3585_v34, %v1466_v45  ;;  %v1471_v28 = vsub.s32 4294967266, %v1466_v45 }
 0x172   :  { %v1613_v48 = vsel %vm1612_vm3, %v1611_v52, 0  ;;  %2070 = vcosq.f32 %v1380_v12  ;;  %v3634_v23 = vmul.u32.u64.low %v3594_v46, %v1545_v51  ;;  %v3635_v17 = vmul.u32.u64.high %v3594_v46, %v1545_v51, %v3634_v23  ;;  %v4025_v51 = vld [vmem:[#allocation11_spill] sm:$0xff] }
 0x173   :  { %v1615_v61 = vand.u32 31, %v1613_v48  ;;  %2072 = vsinq.f32 %v1380_v12  ;;  %vm3639_vm5 = vcmp.le.f32.partialorder %v1395_v4, 0.7853982  ;;  %v1469_v8 = vshrl.u32 %v1451_v5, %v1467_v2 }
 0x174   :  { %v1472_v25 = vadd.s32 127, %v1471_v28  ;;  %v1556_v10 = vadd.s32 1, %v3626_v54  ;;  %v1481_v34 = vsub.s32 4, %v3576_v50  ;;  %v1553_v56 = vmul.u32 %v3594_v46, %v1537_v16 }
 0x175   :  { %v1609_v44 = vor.u32 8388608, %v3598_v3  ;;  %v1616_v0 = vsub.s32 32, %v1615_v61  ;;  %v1286_v52 = vsel %vm1284_vm14, %v3590_v1, %v1285_v26  ;;  %v1289_v4 = vsel %vm1287_vm13, %v1288_v24, %v2069_v43 }
 0x176   :  { %v1470_v22 = vor.u32 %v1469_v8, %v1468_v9  ;;  %v1473_v13 = vshll.u32 %v1472_v25, 23  ;;  %vm1555_vm6 = vc.u32 %v3635_v17, %v3625_v60  ;;  %v1618_v5 = vshll.u32 %v3974_v49, %v1615_v61 }
 0x177   :  { %v1621_v36 = vshll.u32 %v3978_v59, %v1615_v61  ;;  %v1627_v46 = vshll.u32 %v3980_v33, %v1615_v61  ;;  %v1557_v12 = vsel %vm1555_vm6, %v1556_v10, %v3626_v54  ;;  %v1619_v1 = vshrl.u32 %v3978_v59, %v1616_v0 }
 0x178   :  { %v1474_v3 = vor.u32 4788187, %v1473_v13  ;;  %v1477_v55 = vcvt.s32.f32 %v1470_v22  ;;  %v1482_v43 = vsel %vm1397_vm1, %v1481_v34, %v3576_v50  ;;  %v1558_v24 = vadd.s32 %v1557_v12, %v1553_v56 }
 0x179   :  { %v3662_v26 = vshrl.u32 %v1613_v48, 5  ;;  %v1622_v63 = vshrl.u32 %v3979_v57, %v1616_v0  ;;  %vm1390_vm7 = vcmp.eq.s32.totalorder %v3574_v53, 2  ;;  %v1624_v20 = vshll.u32 %v3979_v57, %v1615_v61 }
 0x17a   :  { %v1475_v32 = vand.u32 2147483647, %v1474_v3  ;;  %v1625_v39 = vshrl.u32 %v3980_v33, %v1616_v0  ;;  %v1628_v54 = vshrl.u32 %v3981_v11, %v1616_v0  ;;  %vm1387_vm8 = vcmp.eq.s32.totalorder %v3574_v53, 0 }
 0x17b   :  { %v1559_v45 = vadd.s32 536870912, %v1558_v24  ;;  %v1630_v16 = vshll.u32 %v3981_v11, %v1615_v61  ;;  %v1631_v50 = vshrl.u32 %v3982_v27, %v1616_v0  ;;  %v1704_v2 = vand.u32 2147483647, %v4025_v51 }
 0x17c   :  { %vm1281_vm9 = vweird.f32 %v2549_v14  ;;  %v1478_v9 = vmul.f32 %v1477_v55, %v1475_v32  ;;  %v1620_v28 = vor.u32 %v1619_v1, %v1618_v5  ;;  %v1623_v48 = vor.u32 %v1622_v63, %v1621_v36  ;;  %v2071_v8 = vpop.eup %2070 }
 0x17d   :  { %v1629_v23 = vor.u32 %v1628_v54, %v1627_v46  ;;  %v1290_v25 = vsel %vm1283_vm4, %v1286_v52, %v1289_v4  ;;  %v1484_v10 = vsel %vm3639_vm5, 0, %v1482_v43  ;;  %vm1500_vm11 = vcmp.lt.s32.totalorder %v4022_v47, 0  ;;  %v2073_v34 = vpop.eup %2072 }
 0x17e   :  { %v1560_v61 = vshrl.u32 %v1559_v45, 30  ;;  %vm1633_vm12 = vcmp.lt.s32.totalorder %v3662_v26, 1  ;;  %vm1386_vm14 = vcmp.lt.s32.totalorder %v3574_v53, 2  ;;  %v1479_v56 = vxor.u32 2147483648, %v1478_v9  ;;  %v1807_v45 = vld [vmem:[#allocation2] sm:$0xff] }
 0x17f   :  { %v1626_v22 = vor.u32 %v1625_v39, %v1624_v20  ;;  %vm1636_vm13 = vcmp.lt.s32.totalorder %v3662_v26, 4  ;;  %v3682_v13 = vshll.u32 %v1609_v44, 8  ;;  %v1617_v62 = vshrl.u32 %v3974_v49, %v1616_v0 }
 0x180   :  { %v1561_v5 = vshll.u32 %v1560_v61, 30  ;;  %v1632_v52 = vor.u32 %v1631_v50, %v1630_v16  ;;  %vm1635_vm15 = vcmp.lt.s32.totalorder %v3662_v26, 3  ;;  %v1480_v4 = vsel %vm1397_vm1, %v1479_v56, %v1478_v9 }
 0x181   :  { %vm3690_vm0 = vcmp.le.f32.partialorder %v1498_v15, 0.7853982  ;;  %vm1634_vm10 = vcmp.lt.s32.totalorder %v3662_v26, 2  ;;  %v1641_v44 = vsel %vm1633_vm12, %v1620_v28, %v1623_v48  ;;  %v1642_v0 = vsel %vm1636_vm13, %v1629_v23, 920167782 }
 0x182   :  { %vm1384_vm2 = vweird.f32 %v2553_v40  ;;  %v1388_v46 = vxor.u32 2147483648, %v2073_v34  ;;  %v1391_v3 = vxor.u32 2147483648, %v2071_v8  ;;  %v1483_v55 = vsel %vm3639_vm5, %v2557_v7, %v1480_v4 }
 0x183   :  { %v3703_v15 = vsub.s32 %v1558_v24, %v1561_v5  ;;  %2074 = vcosq.f32 %v1483_v55  ;;  %v1584_v12 = vsub.s32 4, %v1560_v61  ;;  %v1638_v1 = vsel %vm1636_vm13, %v1626_v22, 2102212464 }
 0x184   :  { %v1643_v43 = vsel %vm1635_vm15, %v1626_v22, %v1642_v0  ;;  %2076 = vsinq.f32 %v1483_v55  ;;  %v3709_v63 = vand.u32 3, %v1484_v10  ;;  %v1645_v6 = vsel %vm1633_vm12, %v1623_v48, %v1626_v22 }
 0x185   :  { %v1564_v32 = vsub.s32 0, %v3703_v15  ;;  %v1644_v20 = vsel %vm1634_vm10, %v1641_v44, %v1643_v43  ;;  %v1646_v24 = vsel %vm1636_vm13, %v1632_v52, 1326507024  ;;  %v1392_v16 = vsel %vm1390_vm7, %v1391_v3, %v2073_v34 }
 0x186   :  { %v3719_v39 = vmul.u32.u64.low %v3682_v13, %v1644_v20  ;;  %v3720_v54 = vmul.u32.u64.high %v3682_v13, %v1644_v20, %v3719_v39  ;;  %v1637_v9 = vsel %vm1633_vm12, %v1617_v62, %v1620_v28  ;;  %v1639_v10 = vsel %vm1635_vm15, %v1623_v48, %v1638_v1 }
 0x187   :  { %v1941_v50 = vmin.u32 %v1564_v32, %v3703_v15  ;;  %v1389_v56 = vsel %vm1387_vm8, %v2071_v8, %v1388_v46  ;;  %v1585_v22 = vsel %vm1500_vm11, %v1584_v12, %v1560_v61  ;;  %v1647_v5 = vsel %vm1635_vm15, %v1629_v23, %v1646_v24  ;;  %v1808_v12 = vld [vmem:[#allocation2 + $0x8] sm:$0xff] }
 0x188   :  { %v1707_v52 = vand.u32 2139095040, %v4025_v51  ;;  %v3739_v34 = vsel %vm1281_vm9, nan, %v1290_v25  ;;  %v1648_v28 = vsel %vm1634_vm10, %v1645_v6, %v1647_v5  ;;  %v1823_v48 = vmul.f32 5.656854, %v1807_v45  ;;  %v1810_v45 = vld [vmem:[#allocation2 + $0x18] sm:$0xff]  ;;  %v1812_v5 = vld [vmem:[#allocation2 + $0x28] sm:$0xff] }
 0x189   :  { %v1566_v4 = vclz %v1941_v50  ;;  %v1640_v8 = vsel %vm1634_vm10, %v1637_v9, %v1639_v10  ;;  %v3746_v62 = vmul.u32.u64.low %v3682_v13, %v1648_v28  ;;  %v3747_v61 = vmul.u32.u64.high %v3682_v13, %v1648_v28, %v3746_v62  ;;  %v1811_v50 = vld [vmem:[#allocation2 + $0x20] sm:$0xff] }
 0x18a   :  { %v1708_v44 = vshrl.u32 %v1707_v52, 23  ;;  %v1393_v23 = vsel %vm1386_vm14, %v1389_v56, %v1392_v16  ;;  %vm1490_vm1 = vcmp.eq.s32.totalorder %v3709_v63, 0  ;;  %v1587_v25 = vsel %vm3690_vm0, 0, %v1585_v22  ;;  %v1813_v52 = vld [vmem:[#allocation2 + $0x30] sm:$0xff] }
 0x18b   :  { %v1942_v14 = vadd.s32 4294967294, %v1566_v4  ;;  %v1659_v0 = vadd.s32 1, %v3720_v54  ;;  %v1711_v26 = vand.u32 8388607, %v1704_v2  ;;  %v1839_v3 = vadd.f32 %v1823_v48, %v2862_v37  ;;  %v1809_v37 = vld [vmem:[#allocation2 + $0x10] sm:$0xff] }
 0x18c   :  { %v1948_v46 = vadd.s32 4294967169, %v1708_v44  ;;  %vm1493_vm3 = vcmp.eq.s32.totalorder %v3709_v63, 2  ;;  %v1554_v53 = vadd.s32 %v3625_v60, %v3635_v17  ;;  %v1656_v55 = vmul.u32 %v3682_v13, %v1640_v8 }
 0x18d   :  { %vm1943_vm4 = vcmp.lt.s32.totalorder %v1942_v14, 0  ;;  %v2075_v1 = vpop.eup %2074  ;;  %v3764_v43 = vsel %vm1384_vm2, nan, %v1393_v23  ;;  %vm1658_vm5 = vc.u32 %v3747_v61, %v3719_v39  ;;  %1855 = vst [vmem:[#allocation5] sm:$0xff] %v1839_v3  ;;  %vm1489_vm6 = vcmp.lt.s32.totalorder %v3709_v63, 2 }
 0x18e   :  { %v1569_v32 = vsel %vm1943_vm4, 0, %v1942_v14  ;;  %v1714_v20 = vadd.s32 1, %v1948_v46  ;;  %v2077_v6 = vpop.eup %2076  ;;  %v3770_v24 = vand.u32 3, %v1587_v25  ;;  %v1660_v40 = vsel %vm1658_vm5, %v1659_v0, %v3720_v54 }
 0x18f   :  { %v1570_v60 = vsub.s32 32, %v1569_v32  ;;  %v1571_v17 = vshll.u32 %v3703_v15, %v1569_v32  ;;  %v1574_v13 = vsub.s32 4294967266, %v1569_v32  ;;  %v1712_v16 = vor.u32 8388608, %v1711_v26 }
 0x190   :  { %vm1715_vm7 = vcmp.gt.s32.totalorder %v1714_v20, 0  ;;  %v3773_v9 = vmul.f32 5.656854, %v1808_v12  ;;  %v1661_v22 = vadd.s32 %v1660_v40, %v1656_v55  ;;  %v3775_v4 = vmul.f32 5.656854, %v1809_v37  ;;  %v1816_v40 = vld [vmem:[#allocation2 + $0x48] sm:$0xff] }
 0x191   :  { %v1572_v10 = vshrl.u32 %v1554_v53, %v1570_v60  ;;  %v1575_v56 = vadd.s32 127, %v1574_v13  ;;  %v1491_v28 = vxor.u32 2147483648, %v2077_v6  ;;  %v1494_v15 = vxor.u32 2147483648, %v2075_v1 }
 0x192   :  { %v1716_v48 = vsel %vm1715_vm7, %v1714_v20, 0  ;;  %v3777_v8 = vmul.f32 5.656854, %v1810_v45  ;;  %v1662_v54 = vadd.s32 536870912, %v1661_v22  ;;  %v3779_v23 = vmul.f32 5.656854, %v1811_v50 }
 0x193   :  { %v1573_v62 = vor.u32 %v1572_v10, %v1571_v17  ;;  %v1576_v44 = vshll.u32 %v1575_v56, 23  ;;  %v1718_v14 = vand.u32 31, %v1716_v48  ;;  %v3781_v25 = vshll.u32 %v1712_v16, 8  ;;  %v1815_v45 = vld [vmem:[#allocation2 + $0x40] sm:$0xff] }
 0x194   :  { %v3783_v0 = vmul.f32 5.656854, %v1812_v5  ;;  %v3785_v46 = vmul.f32 5.656854, %v1813_v52  ;;  %v3789_v53 = vadd.s32 %v3719_v39, %v3747_v61  ;;  %v3791_v55 = vshrl.u32 %v1662_v54, 30  ;;  %v1814_v61 = vld [vmem:[#allocation2 + $0x38] sm:$0xff] }
 0x195   :  { %v1577_v26 = vor.u32 4788187, %v1576_v44  ;;  %v1580_v3 = vcvt.s32.f32 %v1573_v62  ;;  %v1492_v12 = vsel %vm1490_vm1, %v2075_v1, %v1491_v28  ;;  %v1495_v32 = vsel %vm1493_vm3, %v1494_v15, %v2077_v6 }
 0x196   :  { %v3797_v20 = vshrl.u32 %v1716_v48, 5  ;;  %v1719_v37 = vsub.s32 32, %v1718_v14  ;;  %vm1487_vm8 = vweird.f32 %v2557_v7  ;;  %v1664_v17 = vshll.u32 %v3791_v55, 30 }
 0x197   :  { %v1578_v60 = vand.u32 2147483647, %v1577_v26  ;;  %v1721_v13 = vshll.u32 %v3974_v49, %v1718_v14  ;;  %v1724_v39 = vshll.u32 %v3978_v59, %v1718_v14  ;;  %v1727_v6 = vshll.u32 %v3979_v57, %v1718_v14 }
 0x198   :  { %v1722_v1 = vshrl.u32 %v3978_v59, %v1719_v37  ;;  %v1725_v16 = vshrl.u32 %v3979_v57, %v1719_v37  ;;  %v1730_v50 = vshll.u32 %v3980_v33, %v1718_v14  ;;  %v3807_v56 = vsub.s32 %v1661_v22, %v1664_v17 }
 0x199   :  { %v1581_v10 = vmul.f32 %v1580_v3, %v1578_v60  ;;  %v1728_v5 = vshrl.u32 %v3980_v33, %v1719_v37  ;;  %v1731_v52 = vshrl.u32 %v3981_v11, %v1719_v37  ;;  %v1496_v28 = vsel %vm1489_vm6, %v1492_v12, %v1495_v32 }
 0x19a   :  { %v3813_v15 = vmul.f32 5.656854, %v1814_v61  ;;  %v3815_v48 = vmul.f32 5.656854, %v1815_v45  ;;  %v3817_v59 = vmul.f32 5.656854, %v1816_v40  ;;  %v1720_v44 = vshrl.u32 %v3974_v49, %v1719_v37 }
 0x19b   :  { %v1582_v62 = vxor.u32 2147483648, %v1581_v10  ;;  %v1667_v57 = vsub.s32 0, %v3807_v56  ;;  %v1723_v22 = vor.u32 %v1722_v1, %v1721_v13  ;;  %v1726_v54 = vor.u32 %v1725_v16, %v1724_v39  ;;  %v1817_v45 = vld [vmem:[#allocation2 + $0x50] sm:$0xff]  ;;  %v1818_v40 = vld [vmem:[#allocation2 + $0x58] sm:$0xff] }
 0x19c   :  { %v1732_v26 = vor.u32 %v1731_v52, %v1730_v50  ;;  %v1733_v33 = vshll.u32 %v3981_v11, %v1718_v14  ;;  %v1734_v3 = vshrl.u32 %v3982_v27, %v1719_v37  ;;  %v1729_v32 = vor.u32 %v1728_v5, %v1727_v6 }
 0x19d   :  { %v1583_v63 = vsel %vm1500_vm11, %v1582_v62, %v1581_v10  ;;  %v1945_v12 = vmin.u32 %v1667_v57, %v3807_v56  ;;  %vm1736_vm9 = vcmp.lt.s32.totalorder %v3797_v20, 1  ;;  %vm1737_vm12 = vcmp.lt.s32.totalorder %v3797_v20, 2  ;;  %v1819_v10 = vld [vmem:[#allocation2 + $0x60] sm:$0xff] }
 0x19e   :  { %v1586_v60 = vsel %vm3690_vm0, %v4022_v47, %v1583_v63  ;;  %v1735_v49 = vor.u32 %v1734_v3, %v1733_v33  ;;  %vm1738_vm14 = vcmp.lt.s32.totalorder %v3797_v20, 3  ;;  %vm1739_vm13 = vcmp.lt.s32.totalorder %v3797_v20, 4 }
 0x19f   :  { %2078 = vcosq.f32 %v1586_v60  ;;  %v1669_v11 = vclz %v1945_v12  ;;  %v1740_v27 = vsel %vm1736_vm9, %v1720_v44, %v1723_v22  ;;  %v1741_v14 = vsel %vm1739_vm13, %v1729_v32, 2102212464 }
 0x1a0   :  { %2080 = vsinq.f32 %v1586_v60  ;;  %v1744_v36 = vsel %vm1736_vm9, %v1723_v22, %v1726_v54  ;;  %v1745_v37 = vsel %vm1739_vm13, %v1732_v26, 920167782  ;;  %vm1596_vm11 = vcmp.eq.s32.totalorder %v3770_v24, 2 }
 0x1a1   :  { %v1946_v17 = vadd.s32 4294967294, %v1669_v11  ;;  %v1742_v13 = vsel %vm1738_vm14, %v1726_v54, %v1741_v14  ;;  %v1746_v39 = vsel %vm1738_vm14, %v1729_v32, %v1745_v37  ;;  %v1748_v61 = vsel %vm1736_vm9, %v1726_v54, %v1729_v32  ;;  %v1820_v11 = vld [vmem:[#allocation2 + $0x68] sm:$0xff] }
 0x1a2   :  { %v1497_v1 = vsel %vm1487_vm8, nan, %v1496_v28  ;;  %vm1593_vm15 = vcmp.eq.s32.totalorder %v3770_v24, 0  ;;  %v1743_v16 = vsel %vm1737_vm12, %v1740_v27, %v1742_v13  ;;  %v1747_v6 = vsel %vm1737_vm12, %v1744_v36, %v1746_v39 }
 0x1a3   :  { %v1749_v50 = vsel %vm1739_vm13, %v1735_v49, 1326507024  ;;  %vm1592_vm0 = vcmp.lt.s32.totalorder %v3770_v24, 2  ;;  %vm1947_vm10 = vcmp.lt.s32.totalorder %v1946_v17, 0  ;;  %vm1590_vm2 = vweird.f32 %v4022_v47 }
 0x1a4   :  { %v1750_v5 = vsel %vm1738_vm14, %v1732_v26, %v1749_v50  ;;  %v3861_v7 = vmul.u32.u64.low %v3781_v25, %v1747_v6  ;;  %v3862_v52 = vmul.u32.u64.high %v3781_v25, %v1747_v6, %v3861_v7  ;;  %v1672_v28 = vsel %vm1947_vm10, 0, %v1946_v17 }
 0x1a5   :  { %v1751_v62 = vsel %vm1737_vm12, %v1748_v61, %v1750_v5  ;;  %v1833_v57 = vmul.f32 5.656854, %v1817_v45  ;;  %v1834_v44 = vmul.f32 5.656854, %v1818_v40  ;;  %v1673_v22 = vsub.s32 32, %v1672_v28 }
 0x1a6   :  { %v1674_v54 = vshll.u32 %v3807_v56, %v1672_v28  ;;  %v1677_v33 = vsub.s32 4294967266, %v1672_v28  ;;  %v1835_v3 = vmul.f32 5.656854, %v1819_v10  ;;  %v1759_v12 = vmul.u32 %v3781_v25, %v1743_v16 }
 0x1a7   :  { %v3870_v26 = vmul.u32.u64.low %v3781_v25, %v1751_v62  ;;  %v3871_v63 = vmul.u32.u64.high %v3781_v25, %v1751_v62, %v3870_v26  ;;  %v1840_v32 = vadd.f32 %v3773_v9, %v2879_v30  ;;  %v1675_v60 = vshrl.u32 %v3789_v53, %v1673_v22  ;;  %v1821_v22 = vld [vmem:[#allocation2 + $0x70] sm:$0xff] }
 0x1a8   :  { %v1678_v20 = vadd.s32 127, %v1677_v33  ;;  %v1762_v49 = vadd.s32 1, %v3862_v52  ;;  %v1841_v56 = vadd.f32 %v3775_v4, %v3101_v38  ;;  %v1842_v27 = vadd.f32 %v3777_v8, %v3105_v35 }
 0x1a9   :  { %v1843_v14 = vadd.f32 %v3779_v23, %v3177_v29  ;;  %v1844_v25 = vadd.f32 %v3783_v0, %v3288_v58  ;;  %v1845_v30 = vadd.f32 %v3785_v46, %v3424_v19  ;;  %1856 = vst [vmem:[#allocation5 + $0x8] sm:$0xff] %v1840_v32  ;;  %v2079_v9 = vpop.eup %2078  ;;  %v1676_v53 = vor.u32 %v1675_v60, %v1674_v54 }
 0x1aa   :  { %v1679_v36 = vshll.u32 %v1678_v20, 23  ;;  %v1846_v37 = vadd.f32 %v3813_v15, %v3451_v42  ;;  %v1847_v38 = vadd.f32 %v3815_v48, %v3566_v41  ;;  %1857 = vst [vmem:[#allocation5 + $0x10] sm:$0xff] %v1841_v56  ;;  %v2081_v35 = vpop.eup %2080  ;;  %v1597_v4 = vxor.u32 2147483648, %v2079_v9  ;;  %1858 = vst [vmem:[#allocation5 + $0x18] sm:$0xff] %v1842_v27 }
 0x1ab   :  { %vm1761_vm1 = vc.u32 %v3871_v63, %v3861_v7  ;;  %v1836_v29 = vmul.f32 5.656854, %v1820_v11  ;;  %v1848_v58 = vadd.f32 %v3817_v59, %v3570_v31  ;;  %1859 = vst [vmem:[#allocation5 + $0x20] sm:$0xff] %v1843_v14  ;;  %1860 = vst [vmem:[#allocation5 + $0x28] sm:$0xff] %v1844_v25  ;;  %v1594_v19 = vxor.u32 2147483648, %v2081_v35 }
 0x1ac   :  { %1861 = vst [vmem:[#allocation5 + $0x30] sm:$0xff] %v1845_v30  ;;  %v1680_v8 = vor.u32 4788187, %v1679_v36  ;;  %v1683_v42 = vcvt.s32.f32 %v1676_v53  ;;  %v1763_v23 = vsel %vm1761_vm1, %v1762_v49, %v3862_v52  ;;  %1862 = vst [vmem:[#allocation5 + $0x38] sm:$0xff] %v1846_v37  ;;  %v1598_v41 = vsel %vm1596_vm11, %v1597_v4, %v2081_v35 }
 0x1ad   :  { %1863 = vst [vmem:[#allocation5 + $0x40] sm:$0xff] %v1847_v38  ;;  %v1764_v0 = vadd.s32 %v1763_v23, %v1759_v12  ;;  %v1849_v46 = vadd.f32 %v1833_v57, %v3739_v34  ;;  %v1850_v15 = vadd.f32 %v1834_v44, %v3764_v43  ;;  %1864 = vst [vmem:[#allocation5 + $0x48] sm:$0xff] %v1848_v58  ;;  %vm1603_vm3 = vcmp.lt.s32.totalorder %v2610_v18, 0 }
 0x1ae   :  { %v1595_v31 = vsel %vm1593_vm15, %v2079_v9, %v1594_v19  ;;  %v1681_v48 = vand.u32 2147483647, %v1680_v8  ;;  %v1851_v59 = vadd.f32 %v1835_v3, %v1497_v1  ;;  %vm1602_vm4 = vcmp.le.f32.partialorder %v1601_v21, 0.7853982  ;;  %v1822_v19 = vld [vmem:[#allocation2 + $0x78] sm:$0xff] }
 0x1af   :  { %v1599_v17 = vsel %vm1592_vm0, %v1595_v31, %v1598_v41  ;;  %v1765_v13 = vadd.s32 536870912, %v1764_v0  ;;  %1865 = vst [vmem:[#allocation5 + $0x50] sm:$0xff] %v1849_v46  ;;  %1866 = vst [vmem:[#allocation5 + $0x58] sm:$0xff] %v1850_v15  ;;  %v1687_v40 = vsub.s32 4, %v3791_v55  ;;  %v1760_v21 = vadd.s32 %v3861_v7, %v3871_v63 }
 0x1b0   :  { %v1600_v39 = vsel %vm1590_vm2, nan, %v1599_v17  ;;  %v1684_v61 = vmul.f32 %v1683_v42, %v1681_v48  ;;  %1867 = vst [vmem:[#allocation5 + $0x60] sm:$0xff] %v1851_v59  ;;  %vm1693_vm8 = vweird.f32 %v2610_v18  ;;  %v1837_v49 = vmul.f32 5.656854, %v1821_v22 }
 0x1b1   :  { %v1766_v34 = vshrl.u32 %v1765_v13, 30  ;;  %v1852_v43 = vadd.f32 %v1836_v29, %v1600_v39  ;;  %v1688_v47 = vsel %vm1603_vm3, %v1687_v40, %v3791_v55  ;;  %vm1706_vm12 = vcmp.lt.s32.totalorder %v4025_v51, 0 }
 0x1b2   :  { %v1685_v45 = vxor.u32 2147483648, %v1684_v61  ;;  %v1690_v10 = vsel %vm1602_vm4, 0, %v1688_v47  ;;  %vm1705_vm14 = vcmp.le.f32.partialorder %v1704_v2, 0.7853982  ;;  %vm1796_vm0 = vweird.f32 %v4025_v51 }
 0x1b3   :  { %v1767_v24 = vshll.u32 %v1766_v34, 30  ;;  %1868 = vst [vmem:[#allocation5 + $0x68] sm:$0xff] %v1852_v43  ;;  %v1694_v28 = vand.u32 3, %v1690_v10  ;;  %v1790_v36 = vsub.s32 4, %v1766_v34  ;;  %v1838_v41 = vmul.f32 5.656854, %v1822_v19 }
 0x1b4   :  { %v1686_v1 = vsel %vm1603_vm3, %v1685_v45, %v1684_v61 }
 0x1b5   :  { %v1689_v16 = vsel %vm1602_vm4, %v2610_v18, %v1686_v1  ;;  %v1768_v6 = vsub.s32 %v1764_v0, %v1767_v24  ;;  %vm1696_vm6 = vcmp.eq.s32.totalorder %v1694_v28, 0  ;;  %vm1699_vm7 = vcmp.eq.s32.totalorder %v1694_v28, 2 }
 0x1b6   :  { %2082 = vcosq.f32 %v1689_v16  ;;  %vm1695_vm9 = vcmp.lt.s32.totalorder %v1694_v28, 2  ;;  %v1791_v35 = vsel %vm1706_vm12, %v1790_v36, %v1766_v34 }
 0x1b7   :  { %2084 = vsinq.f32 %v1689_v16  ;;  %v1770_v50 = vsub.s32 0, %v1768_v6  ;;  %v1793_v4 = vsel %vm1705_vm14, 0, %v1791_v35 }
 0x1b8   :  { %v1797_v29 = vand.u32 3, %v1793_v4 }
 0x1b9   :  { %v1949_v5 = vmin.u32 %v1770_v50, %v1768_v6 }
 0x1ba   :  { %vm1802_vm13 = vcmp.eq.s32.totalorder %v1797_v29, 2  ;;  %vm1799_vm11 = vcmp.eq.s32.totalorder %v1797_v29, 0  ;;  %vm1798_vm15 = vcmp.lt.s32.totalorder %v1797_v29, 2 }
 0x1bb   :  { %v1772_v52 = vclz %v1949_v5 }
 0x1bd   :  { %v1950_v62 = vadd.s32 4294967294, %v1772_v52 }
 0x1bf   :  { %vm1951_vm5 = vcmp.lt.s32.totalorder %v1950_v62, 0 }
 0x1c0   :  { %v2083_v57 = vpop.eup %2082  ;;  %v1775_v44 = vsel %vm1951_vm5, 0, %v1950_v62 }
 0x1c1   :  { %v2085_v54 = vpop.eup %2084  ;;  %v1700_v33 = vxor.u32 2147483648, %v2083_v57  ;;  %v1776_v55 = vsub.s32 32, %v1775_v44  ;;  %v1777_v3 = vshll.u32 %v1768_v6, %v1775_v44  ;;  %v1780_v26 = vsub.s32 4294967266, %v1775_v44 }
 0x1c2   :  { %v1697_v12 = vxor.u32 2147483648, %v2085_v54 }
 0x1c3   :  { %v1701_v32 = vsel %vm1699_vm7, %v1700_v33, %v2085_v54  ;;  %v1778_v60 = vshrl.u32 %v1760_v21, %v1776_v55  ;;  %v1781_v20 = vadd.s32 127, %v1780_v26 }
 0x1c4   :  { %v1698_v7 = vsel %vm1696_vm6, %v2083_v57, %v1697_v12 }
 0x1c5   :  { %v1702_v63 = vsel %vm1695_vm9, %v1698_v7, %v1701_v32  ;;  %v1779_v11 = vor.u32 %v1778_v60, %v1777_v3  ;;  %v1782_v56 = vshll.u32 %v1781_v20, 23 }
 0x1c6   :  { %v1703_v27 = vsel %vm1693_vm8, nan, %v1702_v63 }
 0x1c7   :  { %v1783_v14 = vor.u32 4788187, %v1782_v56  ;;  %v1786_v25 = vcvt.s32.f32 %v1779_v11  ;;  %v1853_v30 = vadd.f32 %v1837_v49, %v1703_v27 }
 0x1c9   :  { %v1784_v9 = vand.u32 2147483647, %v1783_v14  ;;  %1869 = vst [vmem:[#allocation5 + $0x70] sm:$0xff] %v1853_v30 }
 0x1cb   :  { %v1787_v53 = vmul.f32 %v1786_v25, %v1784_v9 }
 0x1cd   :  { %v1788_v18 = vxor.u32 2147483648, %v1787_v53 }
 0x1cf   :  { %v1789_v37 = vsel %vm1706_vm12, %v1788_v18, %v1787_v53 }
 0x1d0   :  { %v1792_v38 = vsel %vm1705_vm14, %v4025_v51, %v1789_v37 }
 0x1d1   :  { %2086 = vcosq.f32 %v1792_v38 }
 0x1d2   :  { %2088 = vsinq.f32 %v1792_v38 }
 0x1db   :  { %v2087_v58 = vpop.eup %2086 }
 0x1dc   :  { %v2089_v8 = vpop.eup %2088  ;;  %v1803_v42 = vxor.u32 2147483648, %v2087_v58 }
 0x1dd   :  { %v1800_v23 = vxor.u32 2147483648, %v2089_v8 }
 0x1de   :  { %v1804_v2 = vsel %vm1802_vm13, %v1803_v42, %v2089_v8 }
 0x1df   :  { %v1801_v0 = vsel %vm1799_vm11, %v2087_v58, %v1800_v23 }
 0x1e0   :  { %v1805_v46 = vsel %vm1798_vm15, %v1801_v0, %v1804_v2 }
 0x1e1   :  { %v1806_v15 = vsel %vm1796_vm0, nan, %v1805_v46 }
 0x1e2   :  { %v1854_v31 = vadd.f32 %v1838_v41, %v1806_v15 }
 0x1e4   :  { %1870 = vst [vmem:[#allocation5 + $0x78] sm:$0xff] %v1854_v31 }
 0x1e5   :  { %2123 = shalt.err (!%p2120_p12)
}
 0x1e6   :  { %s2124_s5 = scalar_lea.hbm %s3940_s3, 2048 }
 0x1e7   :  { %p2125_p13 = scmp.ne.s32.totalorder %s3940_s3, %s2124_s5  ;;  %p2128_p0 = scmp.lt.u32.totalorder %s2124_s5, %s3940_s3 }
 0x1e9   :  { %p2130_p1 = pnand %p2128_p0, %p2125_p13 }
 0x1eb   :  { %2133 = shalt.err (!%p2130_p1)
}
 0x1ec   :  { %1882 = dma.vmem_to_hbm [thread:$0]  %s1877_s2, 2048, %s3940_s3, [#allocation4], %s2139_s22, %s2139_s22, %s2140_s23  }
 0x1ed   :  { %2136 = dma.done.wait [#allocation4], 2048  }
 0x1ee   :  { %2137 = vsyncadd [#allocation4], 4294965248 }
 0x1ef   :  { %1886 = vsyncpa [#allocation3], 1 }
 0x1f0   :  { %1887 = vsyncpa [#allocation4], 1 }

</bundles_post_ra>
